<compile_context>
chip_gen: v6e
topology: v6e:2x2x1
jax: 0.10.0
libtpu: 0.0.40
codegen_flags: <defaults>
</compile_context>

<pallas_src>
import functools
from collections import namedtuple

import jax
import jax.numpy as jnp
from jax import lax
from jax.experimental import pallas as pl
from jax.experimental.pallas import tpu as pltpu


_LANE = 128
# Levels whose (a, b) pair is at most this many bytes (counted in f32) are
# fused into a single grid-less pallas_call: their DMA time is far below the
# per-call dispatch / pipeline-fill overhead, so tiling buys nothing.
_SMALL_PAIR_F32_BYTES = 1 << 20

_Budget = namedtuple("_Budget", ["input_budget", "vmem_limit", "max_tile"])


def _cdiv(a, b):
    return -(-a // b)


def _round_up(x, m):
    return _cdiv(x, m) * m


@functools.lru_cache(maxsize=1)
def _tpu_budget():
    """Generation-aware VMEM budgets for the tiled kernel."""
    try:
        vmem_cap = int(pltpu.get_tpu_info().vmem_capacity_bytes)
    except Exception:
        vmem_cap = 64 * 1024 * 1024  # conservative (v7x-class) fallback
    if vmem_cap >= 96 * 1024 * 1024:
        # v5e / v6e: 128 MiB physical VMEM -> spend headroom on longer DMAs.
        return _Budget(input_budget=24 << 20, vmem_limit=64 << 20, max_tile=65536)
    # v7x-class: 64 MiB physical VMEM -> keep scoped limit at half of physical.
    return _Budget(input_budget=12 << 20, vmem_limit=32 << 20, max_tile=32768)


# --------------------------------------------------------------------------
# Tiled path (large levels): grid = (batch, lane-tiles), whole C per block,
# chunked f32 accumulation over the channel axis.
# --------------------------------------------------------------------------
def _make_tiled_kernel(C, chunk):
    """Kernel for (C, tile) input blocks -> (1, tile) output block."""
    n_chunks, tail = divmod(C, chunk)

    def kernel(a_ref, b_ref, o_ref):
        tile = o_ref.shape[-1]
        acc = jnp.zeros((1, tile), jnp.float32)

        def chunk_sum(start, size):
            a = a_ref[pl.ds(start, size), :].astype(jnp.float32)
            b = b_ref[pl.ds(start, size), :].astype(jnp.float32)
            return jnp.sum(a * b, axis=0, keepdims=True)

        if n_chunks > 0:
            def body(i, acc):
                start = pl.multiple_of(i * chunk, chunk)
                return acc + chunk_sum(start, chunk)

            acc = lax.fori_loop(0, n_chunks, body, acc,
                                unroll=(n_chunks <= 16))
        if tail > 0:
            acc = acc + chunk_sum(n_chunks * chunk, tail)

        o_ref[...] = acc.astype(o_ref.dtype)

    return kernel


def _pick_lane_tile(N, C, HW, elem_bytes, pack, budget):
    """Largest multiple-of-128 lane tile whose double-buffered inputs plus
    f32 chunk temporaries fit the VMEM input budget."""
    cpad = _round_up(C, pack)
    # 2 inputs x 2 pipeline buffers + 3 f32 chunk temporaries (a, b, a*b)
    # + f32 accumulator + double-buffered output (<= 4B/lane each).
    per_lane = 4 * cpad * elem_bytes + 3 * pack * 4 + 16
    tile = (budget.input_budget // per_lane) // _LANE * _LANE
    tile = max(_LANE, min(tile, budget.max_tile, _round_up(HW, _LANE)))

    # Make sure the grid has a few blocks (v7x megacore + pipeline overlap).
    if N * _cdiv(HW, tile) < 4 and HW > _LANE:
        want_tiles = _cdiv(4, max(N, 1))
        tile = max(_LANE, min(tile, _round_up(_cdiv(HW, want_tiles), _LANE)))
    return tile


def _channel_corr_tiled(a, b):
    """sum(a * b, axis=1, keepdims=True) for NCHW inputs (large levels)."""
    N, C, H, W = a.shape
    HW = H * W
    # Contiguous reshape: a bitcast, no HBM traffic.
    x = a.reshape(N, C, HW)
    y = b.reshape(N, C, HW)

    elem_bytes = jnp.dtype(a.dtype).itemsize
    pack = 8 * max(1, 4 // elem_bytes)        # sublanes per packed 32-bit tier
    budget = _tpu_budget()
    tile = _pick_lane_tile(N, C, HW, elem_bytes, pack, budget)
    grid = (N, _cdiv(HW, tile))               # last block may be partial (OOB-masked)

    out = pl.pallas_call(
        _make_tiled_kernel(C, pack),
        out_shape=jax.ShapeDtypeStruct((N, 1, HW), a.dtype),
        grid_spec=pltpu.PrefetchScalarGridSpec(
            num_scalar_prefetch=0,
            grid=grid,
            in_specs=[
                pl.BlockSpec((None, C, tile), lambda n, t: (n, 0, t)),
                pl.BlockSpec((None, C, tile), lambda n, t: (n, 0, t)),
            ],
            out_specs=pl.BlockSpec((None, 1, tile), lambda n, t: (n, 0, t)),
        ),
        compiler_params=pltpu.CompilerParams(
            dimension_semantics=("parallel", "parallel"),
            vmem_limit_bytes=budget.vmem_limit,
        ),
    )(x, y)
    return out.reshape(N, 1, H, W)


# --------------------------------------------------------------------------
# Fused path (small levels): one grid-less pallas_call handling every small
# level at once — whole arrays in VMEM, single dispatch.
# --------------------------------------------------------------------------
def _make_fused_small_kernel(n_levels):
    def kernel(*refs):
        in_refs = refs[:2 * n_levels]
        out_refs = refs[2 * n_levels:]
        for i in range(n_levels):
            a = in_refs[2 * i][...].astype(jnp.float32)
            b = in_refs[2 * i + 1][...].astype(jnp.float32)
            out_refs[i][...] = jnp.sum(a * b, axis=1, keepdims=True
                                       ).astype(out_refs[i].dtype)
    return kernel


def _channel_corr_fused_small(pairs):
    """One pallas_call computing the channel correlation for several small
    (a, b) NCHW pairs.  Returns a list of (N, 1, H, W) arrays."""
    ins = []
    out_shapes = []
    out_4d_shapes = []
    for a, b in pairs:
        N, C, H, W = a.shape
        ins.append(a.reshape(N, C, H * W))
        ins.append(b.reshape(N, C, H * W))
        out_shapes.append(jax.ShapeDtypeStruct((N, 1, H * W), a.dtype))
        out_4d_shapes.append((N, 1, H, W))

    budget = _tpu_budget()
    outs = pl.pallas_call(
        _make_fused_small_kernel(len(pairs)),
        out_shape=tuple(out_shapes),
        compiler_params=pltpu.CompilerParams(
            vmem_limit_bytes=budget.vmem_limit,
        ),
    )(*ins)
    if not isinstance(outs, (tuple, list)):
        outs = (outs,)
    return [o.reshape(s) for o, s in zip(outs, out_4d_shapes)]


# --------------------------------------------------------------------------
# CatMixCorr.forward
# --------------------------------------------------------------------------
def cat_mix_corr(img_feats_list, gen_img_feats_list):
    """Pallas equivalent of CatMixCorr.forward.

    Returns [corr(3), corr(2), corr(1), corr(0)], as in the PyTorch module.
    """
    order = (3, 2, 1, 0)
    results = {}
    small = []  # (level_idx, a, b) for levels routed to the fused call

    for idx in order:
        a = img_feats_list[idx]
        b = gen_img_feats_list[idx]
        assert a.shape == b.shape, (a.shape, b.shape)
        N, C, H, W = a.shape
        pair_f32_bytes = 2 * N * C * H * W * 4
        if pair_f32_bytes <= _SMALL_PAIR_F32_BYTES:
            small.append((idx, a, b))
        else:
            results[idx] = _channel_corr_tiled(a, b)

    if small:
        fused = _channel_corr_fused_small([(a, b) for _, a, b in small])
        for (idx, _, _), out in zip(small, fused):
            results[idx] = out

    return [results[idx] for idx in order]


def _reference(img_feats_list, gen_img_feats_list):
    out = []
    for idx in (3, 2, 1, 0):
        a = img_feats_list[idx].astype(jnp.float32)
        b = gen_img_feats_list[idx].astype(jnp.float32)
        out.append(jnp.sum(a * b, axis=1, keepdims=True))
    return out


if __name__ == "__main__":
    key = jax.random.PRNGKey(0)

    # Small synthetic 4-level feature pyramid (NCHW).  Level 0 is big enough
    # (HW = 8100, not a multiple of 128; C = 12, not a multiple of 8) to
    # exercise the tiled path including partial-block masking and the channel
    # tail chunk; levels 1-3 exercise the fused small-level path.
    N = 2
    shapes = [
        (N, 12, 90, 90),   # level 0 -> tiled Pallas path
        (N, 8, 24, 24),    # level 1 -> fused small path
        (N, 16, 12, 12),   # level 2 -> fused small path
        (N, 32, 6, 6),     # level 3 -> fused small path
    ]

    keys = jax.random.split(key, 2 * len(shapes))
    img_feats = [jax.random.normal(keys[i], s, dtype=jnp.float32)
                 for i, s in enumerate(shapes)]
    gen_feats = [jax.random.normal(keys[len(shapes) + i], s, dtype=jnp.float32)
                 for i, s in enumerate(shapes)]

    corr_list = jax.block_until_ready(cat_mix_corr(img_feats, gen_feats))

    ref_list = _reference(img_feats, gen_feats)
    for got, ref in zip(corr_list, ref_list):
        assert got.shape == ref.shape, (got.shape, ref.shape)
        err = jnp.max(jnp.abs(got.astype(jnp.float32) - ref))
        assert jnp.allclose(got.astype(jnp.float32), ref,
                            atol=1e-4, rtol=1e-4), float(err)

    print("KERNEL_OK")
</pallas_src>

<mosaic_0001>
module attributes {stable_mosaic.version = 11 : i64} {
  func.func @kernel(%arg0: i32, %arg1: i32, %arg2: memref<1x12x4096xf32, #tpu.memory_space<vmem>>, %arg3: memref<1x12x4096xf32, #tpu.memory_space<vmem>>, %arg4: memref<1x1x4096xf32, #tpu.memory_space<vmem>>) attributes {dimension_semantics = [#tpu.dimension_semantics<parallel>, #tpu.dimension_semantics<parallel>], iteration_bounds = array<i64: 2, 2>, scalar_prefetch = 0 : i64, scratch_operands = 0 : i64, tpu.core_type = #tpu.core_type<tc>, window_params = [{transform_indices = @transform_0, window_bounds = array<i64: 1, 12, 4096>}, {transform_indices = @transform_1, window_bounds = array<i64: 1, 12, 4096>}, {transform_indices = @transform_2, window_bounds = array<i64: 1, 1, 4096>}]} {
    %cst = arith.constant 0.000000e+00 : f32
    %0 = vector.broadcast %cst : f32 to vector<1x4096xf32>
    %c0_i32 = arith.constant 0 : i32
    %c8_i32 = arith.constant 8 : i32
    %1 = arith.muli %c0_i32, %c8_i32 : i32
    %2 = tpu.assume_multiple %1, 8 : i32
    %c0 = arith.constant 0 : index
    %3 = arith.index_cast %2 : i32 to index
    %c0_0 = arith.constant 0 : index
    %4 = vector.load %arg2[%c0, %3, %c0_0] : memref<1x12x4096xf32, #tpu.memory_space<vmem>>, vector<1x8x4096xf32>
    %5 = vector.shape_cast %4 : vector<1x8x4096xf32> to vector<8x4096xf32>
    %c0_1 = arith.constant 0 : index
    %6 = arith.index_cast %2 : i32 to index
    %c0_2 = arith.constant 0 : index
    %7 = vector.load %arg3[%c0_1, %6, %c0_2] : memref<1x12x4096xf32, #tpu.memory_space<vmem>>, vector<1x8x4096xf32>
    %8 = vector.shape_cast %7 : vector<1x8x4096xf32> to vector<8x4096xf32>
    %9 = arith.mulf %5, %8 : vector<8x4096xf32>
    %cst_3 = arith.constant dense<0.000000e+00> : vector<4096xf32>
    %10 = vector.multi_reduction <add>, %9, %cst_3 [0] : vector<8x4096xf32> to vector<4096xf32>
    %11 = vector.shape_cast %10 : vector<4096xf32> to vector<1x4096xf32>
    %12 = arith.addf %0, %11 : vector<1x4096xf32>
    %c1_i32 = arith.constant 1 : i32
    %c0_4 = arith.constant 0 : index
    %c8 = arith.constant 8 : index
    %c0_5 = arith.constant 0 : index
    %13 = vector.load %arg2[%c0_4, %c8, %c0_5] : memref<1x12x4096xf32, #tpu.memory_space<vmem>>, vector<1x4x4096xf32>
    %14 = vector.shape_cast %13 : vector<1x4x4096xf32> to vector<4x4096xf32>
    %c0_6 = arith.constant 0 : index
    %c8_7 = arith.constant 8 : index
    %c0_8 = arith.constant 0 : index
    %15 = vector.load %arg3[%c0_6, %c8_7, %c0_8] : memref<1x12x4096xf32, #tpu.memory_space<vmem>>, vector<1x4x4096xf32>
    %16 = vector.shape_cast %15 : vector<1x4x4096xf32> to vector<4x4096xf32>
    %17 = arith.mulf %14, %16 : vector<4x4096xf32>
    %cst_9 = arith.constant dense<0.000000e+00> : vector<4096xf32>
    %18 = vector.multi_reduction <add>, %17, %cst_9 [0] : vector<4x4096xf32> to vector<4096xf32>
    %19 = vector.shape_cast %18 : vector<4096xf32> to vector<1x4096xf32>
    %20 = arith.addf %12, %19 : vector<1x4096xf32>
    %c0_10 = arith.constant 0 : index
    %c0_11 = arith.constant 0 : index
    %c0_12 = arith.constant 0 : index
    %21 = vector.load %arg4[%c0_10, %c0_11, %c0_12] : memref<1x1x4096xf32, #tpu.memory_space<vmem>>, vector<1x1x4096xf32>
    %22 = vector.shape_cast %21 : vector<1x1x4096xf32> to vector<1x4096xf32>
    %23 = vector.shape_cast %20 : vector<1x4096xf32> to vector<1x1x4096xf32>
    tpu.vector_store %arg4[%c0_10, %c0_11, %c0_12], %23 {strides = array<i32>} : memref<1x1x4096xf32, #tpu.memory_space<vmem>>, vector<1x1x4096xf32>,
    return
  }
  func.func @transform_0(%arg0: i32, %arg1: i32) -> (i32, i32, i32) {
    %c0_i32 = arith.constant 0 : i32
    %c0_i32_0 = arith.constant 0 : i32
    return %arg0, %c0_i32, %arg1 : i32, i32, i32
  }
  func.func @transform_1(%arg0: i32, %arg1: i32) -> (i32, i32, i32) {
    %c0_i32 = arith.constant 0 : i32
    %c0_i32_0 = arith.constant 0 : i32
    return %arg0, %c0_i32, %arg1 : i32, i32, i32
  }
  func.func @transform_2(%arg0: i32, %arg1: i32) -> (i32, i32, i32) {
    %c0_i32 = arith.constant 0 : i32
    %c0_i32_0 = arith.constant 0 : i32
    return %arg0, %c0_i32, %arg1 : i32, i32, i32
  }
}

</mosaic_0001>

<bundles_post_ra>
// kernel: tpu_custom_call.1
= control target key start
LH: loop header
LB: loop body
LE: loop exit
PB: predicated region body
PF: predicated region fallthrough
CT: control target
= control target key end

     0   :  { %7 = vsyncpa [#allocation5], 0  ;;  %s2681_s0 = inlined_call_operand.vmem [shape: f32[2,12,8100], index: 0, kind: input, shape index: {}]   ;;  %s2682_s1 = inlined_call_operand.vmem [shape: f32[2,12,8100], index: 1, kind: input, shape index: {}]   ;;  %s2683_s2 = inlined_call_operand.hbm [shape: f32[2,1,8100], index: 2, kind: output, shape index: {}]  }
   0x1   :  { %9 = vsyncpa [#allocation5 + $0x1], 0  ;;  %s1718_s9 = smov 0   ;;  %s1720_s10 = smov 0  }
   0x2   :  { %s1722_s11 = smov 0   ;;  %s1724_s12 = smov 0  }
   0x3   :  { %s1726_s13 = smov 0   ;;  %s1728_s14 = smov 0  }
   0x4   :  { %s1730_s15 = smov 0   ;;  %s1732_s16 = smov 0  }
   0x5 LB: > { %s1513_s17 = sadd.s32 4294967295, %s1699_s16   ;;  %s1514_s18 = sadd.s32 4294967294, %s1699_s16   ;;  %s1699_s16 = sphi %s1732_s16, %s15_s16   ;;  %s1695_s15 = sphi %s1730_s15, %s2759_s15   ;;  %s1691_s14 = sphi %s1728_s14, %s2758_s14   ;;  %s1687_s13 = sphi %s1726_s13, %s2757_s13   ;;  %s1683_s12 = sphi %s1724_s12, %s2756_s12   ;;  %s1679_s11 = sphi %s1722_s11, %s2755_s11   ;;  %s1675_s10 = sphi %s1720_s10, %s2754_s10   ;;  %s1671_s9 = sphi %s1718_s9, %s2753_s9  }
   0x6   : > { %s24_s19 = sadd.s32 1, %s1691_s14  ;;  %s27_s20 = sadd.s32 1, %s1695_s15 }
   0x7   : > { %p25_p0 = scmp.ge.s32.totalorder %s24_s19, 2  ;;  %p43_p1 = scmp.ne.s32.totalorder %s1679_s11, %s1675_s10 }
   0x8   : > { %p44_p2 = scmp.eq.s32.totalorder %s1699_s16, 0  ;;  %p103_p5 = scmp.eq.s32.totalorder %s1513_s17, 3 }
   0x9   : > { %s2761_s19 = smov (%p25_p0, %s24_s19), 0  ;;  %s2763_s20 = smov (!%p25_p0, %s27_s20), %s1695_s15 }
   0xa   : > { %s32_s21 = ssub.s32 %s1691_s14, %s2761_s19  ;;  %p1770_p3 = por %p44_p2, %p43_p1 }
   0xb   : > { %p29_p4 = scmp.ge.s32.totalorder %s2763_s20, 2  ;;  %p108_p6 = scmp.ne.s32.totalorder %s1675_s10, %s1671_s9 }
   0xc   : > { %p109_p7 = scmp.eq.s32.totalorder %s1514_s18, 3  ;;  %p1778_p8 = por %p103_p5, %p43_p1 }
   0xd   : > { %s2765_s20 = smov (%p29_p4, %s2763_s20), 0  ;;  %s36_s27 = sadd.s32 1, %s1679_s11 }
   0xe   : > { %p1782_p9 = por %p109_p7, %p108_p6  ;;  %s31_s25 = ssub.s32 %s1695_s15, %s2765_s20 }
   0xf   : > { %s33_s26 = sor.u32 %s32_s21, %s31_s25  ;;  %p1516_p11 = scmp.ge.s32.totalorder %s1699_s16, 4 }
  0x10   : > { %p34_p10 = scmp.eq.s32.totalorder %s33_s26, 0 }
  0x11   : > { %125 = sbr.rel (%p1516_p11) target bundleno = 100 (0x64), region = 16 }
  0x12   : > { %s1790_s28 = scalar_select %p34_p10, %s1679_s11, %s36_s27  }
  0x16   : > { %128 = sbr.rel (!%p1770_p3) target bundleno = 61 (0x3d), region = 20  ;;  %s130_s29 = sand.u32 (%p1770_p3), 1, %s1679_s11  }
  0x17   : > { %s1518_s30 = sshll.u32 (%p1770_p3), %s1691_s14, 5  ;;  %s1517_s3 = sshll.u32 (%p1770_p3), %s130_s29, 9 }
  0x18   : > { %s1519_s4 = sshll.u32 (%p1770_p3), %s1695_s15, 7  ;;  %s1806_s18 = scalar_lea.vmem (%p1770_p3), [#allocation2], %s1517_s3 }
  0x19   : > { %s135_s5 = sadd.s32 (%p1770_p3), %s1519_s4, %s1518_s30 }
  0x1a   : > { %s1520_s6 = sshll.u32 (%p1770_p3), %s135_s5, 3 }
  0x1b   : > { %s1801_s17 = scalar_lea.vmem %s2681_s0, %s1520_s6 }
  0x1c   : > { %v150_v0 = vld [vmem:[%s1801_s17] sm:$0xff]  ;;  %v152_v1 = vld [vmem:[%s1801_s17 + $0x8] sm:$0xff]  ;;  %v154_v2 = vld [vmem:[%s1801_s17 + $0x10] sm:$0xff] }
  0x1d   : > { %151 = vst [vmem:[%s1806_s18] sm:$0xff] %v150_v0  ;;  %153 = vst [vmem:[%s1806_s18 + $0x8] sm:$0xff] %v152_v1  ;;  %v156_v3 = vld [vmem:[%s1801_s17 + $0x18] sm:$0xff]  ;;  %v158_v4 = vld [vmem:[%s1801_s17 + $0x20] sm:$0xff] }
  0x1e   : > { %155 = vst [vmem:[%s1806_s18 + $0x10] sm:$0xff] %v154_v2  ;;  %v160_v5 = vld [vmem:[%s1801_s17 + $0x28] sm:$0xff]  ;;  %157 = vst [vmem:[%s1806_s18 + $0x18] sm:$0xff] %v156_v3  ;;  %v162_v6 = vld [vmem:[%s1801_s17 + $0x30] sm:$0xff] }
  0x1f   : > { %159 = vst [vmem:[%s1806_s18 + $0x20] sm:$0xff] %v158_v4  ;;  %161 = vst [vmem:[%s1806_s18 + $0x28] sm:$0xff] %v160_v5  ;;  %v164_v7 = vld [vmem:[%s1801_s17 + $0x38] sm:$0xff]  ;;  %v166_v8 = vld [vmem:[%s1801_s17 + $0x40] sm:$0xff] }
  0x20   : > { %163 = vst [vmem:[%s1806_s18 + $0x30] sm:$0xff] %v162_v6  ;;  %165 = vst [vmem:[%s1806_s18 + $0x38] sm:$0xff] %v164_v7  ;;  %v168_v9 = vld [vmem:[%s1801_s17 + $0x48] sm:$0xff]  ;;  %v170_v10 = vld [vmem:[%s1801_s17 + $0x50] sm:$0xff] }
  0x21   : > { %167 = vst [vmem:[%s1806_s18 + $0x40] sm:$0xff] %v166_v8  ;;  %v172_v11 = vld [vmem:[%s1801_s17 + $0x58] sm:$0xff]  ;;  %169 = vst [vmem:[%s1806_s18 + $0x48] sm:$0xff] %v168_v9  ;;  %v174_v12 = vld [vmem:[%s1801_s17 + $0x60] sm:$0xff] }
  0x22   : > { %171 = vst [vmem:[%s1806_s18 + $0x50] sm:$0xff] %v170_v10  ;;  %173 = vst [vmem:[%s1806_s18 + $0x58] sm:$0xff] %v172_v11  ;;  %v176_v13 = vld [vmem:[%s1801_s17 + $0x68] sm:$0xff]  ;;  %v178_v14 = vld [vmem:[%s1801_s17 + $0x70] sm:$0xff] }
  0x23   : > { %175 = vst [vmem:[%s1806_s18 + $0x60] sm:$0xff] %v174_v12  ;;  %177 = vst [vmem:[%s1806_s18 + $0x68] sm:$0xff] %v176_v13  ;;  %v180_v15 = vld [vmem:[%s1801_s17 + $0x78] sm:$0xff]  ;;  %v182_v16 = vld [vmem:[%s1801_s17 + $0x80] sm:$0xff] }
  0x24   : > { %179 = vst [vmem:[%s1806_s18 + $0x70] sm:$0xff] %v178_v14  ;;  %v184_v17 = vld [vmem:[%s1801_s17 + $0x88] sm:$0xff]  ;;  %181 = vst [vmem:[%s1806_s18 + $0x78] sm:$0xff] %v180_v15  ;;  %v186_v18 = vld [vmem:[%s1801_s17 + $0x90] sm:$0xff] }
  0x25   : > { %183 = vst [vmem:[%s1806_s18 + $0x80] sm:$0xff] %v182_v16  ;;  %185 = vst [vmem:[%s1806_s18 + $0x88] sm:$0xff] %v184_v17  ;;  %v188_v19 = vld [vmem:[%s1801_s17 + $0x98] sm:$0xff]  ;;  %v190_v20 = vld [vmem:[%s1801_s17 + $0xa0] sm:$0xff] }
  0x26   : > { %187 = vst [vmem:[%s1806_s18 + $0x90] sm:$0xff] %v186_v18  ;;  %189 = vst [vmem:[%s1806_s18 + $0x98] sm:$0xff] %v188_v19  ;;  %v192_v21 = vld [vmem:[%s1801_s17 + $0xa8] sm:$0xff]  ;;  %v194_v22 = vld [vmem:[%s1801_s17 + $0xb0] sm:$0xff] }
  0x27   : > { %191 = vst [vmem:[%s1806_s18 + $0xa0] sm:$0xff] %v190_v20  ;;  %v196_v23 = vld [vmem:[%s1801_s17 + $0xb8] sm:$0xff]  ;;  %193 = vst [vmem:[%s1806_s18 + $0xa8] sm:$0xff] %v192_v21  ;;  %v198_v24 = vld [vmem:[%s1801_s17 + $0xc0] sm:$0xff] }
  0x28   : > { %195 = vst [vmem:[%s1806_s18 + $0xb0] sm:$0xff] %v194_v22  ;;  %197 = vst [vmem:[%s1806_s18 + $0xb8] sm:$0xff] %v196_v23  ;;  %v200_v25 = vld [vmem:[%s1801_s17 + $0xc8] sm:$0xff]  ;;  %v202_v26 = vld [vmem:[%s1801_s17 + $0xd0] sm:$0xff] }
  0x29   : > { %199 = vst [vmem:[%s1806_s18 + $0xc0] sm:$0xff] %v198_v24  ;;  %201 = vst [vmem:[%s1806_s18 + $0xc8] sm:$0xff] %v200_v25  ;;  %v204_v27 = vld [vmem:[%s1801_s17 + $0xd8] sm:$0xff]  ;;  %v206_v28 = vld [vmem:[%s1801_s17 + $0xe0] sm:$0xff] }
  0x2a   : > { %203 = vst [vmem:[%s1806_s18 + $0xd0] sm:$0xff] %v202_v26  ;;  %v208_v29 = vld [vmem:[%s1801_s17 + $0xe8] sm:$0xff]  ;;  %205 = vst [vmem:[%s1806_s18 + $0xd8] sm:$0xff] %v204_v27  ;;  %v210_v30 = vld [vmem:[%s1801_s17 + $0xf0] sm:$0xff] }
  0x2b   : > { %207 = vst [vmem:[%s1806_s18 + $0xe0] sm:$0xff] %v206_v28  ;;  %209 = vst [vmem:[%s1806_s18 + $0xe8] sm:$0xff] %v208_v29  ;;  %v212_v31 = vld [vmem:[%s1801_s17 + $0xf8] sm:$0xff]  ;;  %v214_v32 = vld [vmem:[%s1801_s17 + $0x200] sm:$0xff] }
  0x2c   : > { %211 = vst [vmem:[%s1806_s18 + $0xf0] sm:$0xff] %v210_v30  ;;  %213 = vst [vmem:[%s1806_s18 + $0xf8] sm:$0xff] %v212_v31  ;;  %v216_v33 = vld [vmem:[%s1801_s17 + $0x208] sm:$0xff]  ;;  %v218_v34 = vld [vmem:[%s1801_s17 + $0x210] sm:$0xff] }
  0x2d   : > { %215 = vst [vmem:[%s1806_s18 + $0x100] sm:$0xff] %v214_v32  ;;  %v220_v35 = vld [vmem:[%s1801_s17 + $0x218] sm:$0xff]  ;;  %217 = vst [vmem:[%s1806_s18 + $0x108] sm:$0xff] %v216_v33  ;;  %v222_v36 = vld [vmem:[%s1801_s17 + $0x220] sm:$0xff] }
  0x2e   : > { %219 = vst [vmem:[%s1806_s18 + $0x110] sm:$0xff] %v218_v34  ;;  %221 = vst [vmem:[%s1806_s18 + $0x118] sm:$0xff] %v220_v35  ;;  %v224_v37 = vld [vmem:[%s1801_s17 + $0x228] sm:$0xff]  ;;  %v226_v38 = vld [vmem:[%s1801_s17 + $0x230] sm:$0xff] }
  0x2f   : > { %223 = vst [vmem:[%s1806_s18 + $0x120] sm:$0xff] %v222_v36  ;;  %225 = vst [vmem:[%s1806_s18 + $0x128] sm:$0xff] %v224_v37  ;;  %v228_v39 = vld [vmem:[%s1801_s17 + $0x238] sm:$0xff]  ;;  %v230_v40 = vld [vmem:[%s1801_s17 + $0x240] sm:$0xff] }
  0x30   : > { %227 = vst [vmem:[%s1806_s18 + $0x130] sm:$0xff] %v226_v38  ;;  %v232_v41 = vld [vmem:[%s1801_s17 + $0x248] sm:$0xff]  ;;  %229 = vst [vmem:[%s1806_s18 + $0x138] sm:$0xff] %v228_v39  ;;  %v234_v42 = vld [vmem:[%s1801_s17 + $0x250] sm:$0xff] }
  0x31   : > { %231 = vst [vmem:[%s1806_s18 + $0x140] sm:$0xff] %v230_v40  ;;  %233 = vst [vmem:[%s1806_s18 + $0x148] sm:$0xff] %v232_v41  ;;  %v236_v43 = vld [vmem:[%s1801_s17 + $0x258] sm:$0xff]  ;;  %v238_v44 = vld [vmem:[%s1801_s17 + $0x260] sm:$0xff] }
  0x32   : > { %235 = vst [vmem:[%s1806_s18 + $0x150] sm:$0xff] %v234_v42  ;;  %237 = vst [vmem:[%s1806_s18 + $0x158] sm:$0xff] %v236_v43  ;;  %v240_v45 = vld [vmem:[%s1801_s17 + $0x268] sm:$0xff]  ;;  %v242_v46 = vld [vmem:[%s1801_s17 + $0x270] sm:$0xff] }
  0x33   : > { %239 = vst [vmem:[%s1806_s18 + $0x160] sm:$0xff] %v238_v44  ;;  %v244_v47 = vld [vmem:[%s1801_s17 + $0x278] sm:$0xff]  ;;  %241 = vst [vmem:[%s1806_s18 + $0x168] sm:$0xff] %v240_v45  ;;  %v246_v48 = vld [vmem:[%s1801_s17 + $0x280] sm:$0xff] }
  0x34   : > { %243 = vst [vmem:[%s1806_s18 + $0x170] sm:$0xff] %v242_v46  ;;  %245 = vst [vmem:[%s1806_s18 + $0x178] sm:$0xff] %v244_v47  ;;  %v248_v49 = vld [vmem:[%s1801_s17 + $0x288] sm:$0xff]  ;;  %v250_v50 = vld [vmem:[%s1801_s17 + $0x290] sm:$0xff] }
  0x35   : > { %247 = vst [vmem:[%s1806_s18 + $0x180] sm:$0xff] %v246_v48  ;;  %249 = vst [vmem:[%s1806_s18 + $0x188] sm:$0xff] %v248_v49  ;;  %v252_v51 = vld [vmem:[%s1801_s17 + $0x298] sm:$0xff]  ;;  %v254_v52 = vld [vmem:[%s1801_s17 + $0x2a0] sm:$0xff] }
  0x36   : > { %251 = vst [vmem:[%s1806_s18 + $0x190] sm:$0xff] %v250_v50  ;;  %v256_v53 = vld [vmem:[%s1801_s17 + $0x2a8] sm:$0xff]  ;;  %253 = vst [vmem:[%s1806_s18 + $0x198] sm:$0xff] %v252_v51  ;;  %v258_v54 = vld [vmem:[%s1801_s17 + $0x2b0] sm:$0xff] }
  0x37   : > { %255 = vst [vmem:[%s1806_s18 + $0x1a0] sm:$0xff] %v254_v52  ;;  %257 = vst [vmem:[%s1806_s18 + $0x1a8] sm:$0xff] %v256_v53  ;;  %v260_v55 = vld [vmem:[%s1801_s17 + $0x2b8] sm:$0xff]  ;;  %v262_v56 = vld [vmem:[%s1801_s17 + $0x2c0] sm:$0xff] }
  0x38   : > { %259 = vst [vmem:[%s1806_s18 + $0x1b0] sm:$0xff] %v258_v54  ;;  %261 = vst [vmem:[%s1806_s18 + $0x1b8] sm:$0xff] %v260_v55  ;;  %v264_v57 = vld [vmem:[%s1801_s17 + $0x2c8] sm:$0xff]  ;;  %v266_v58 = vld [vmem:[%s1801_s17 + $0x2d0] sm:$0xff] }
  0x39   : > { %263 = vst [vmem:[%s1806_s18 + $0x1c0] sm:$0xff] %v262_v56  ;;  %v268_v59 = vld [vmem:[%s1801_s17 + $0x2d8] sm:$0xff]  ;;  %265 = vst [vmem:[%s1806_s18 + $0x1c8] sm:$0xff] %v264_v57  ;;  %v270_v60 = vld [vmem:[%s1801_s17 + $0x2e0] sm:$0xff] }
  0x3a   : > { %267 = vst [vmem:[%s1806_s18 + $0x1d0] sm:$0xff] %v266_v58  ;;  %269 = vst [vmem:[%s1806_s18 + $0x1d8] sm:$0xff] %v268_v59  ;;  %v272_v61 = vld [vmem:[%s1801_s17 + $0x2e8] sm:$0xff]  ;;  %v274_v62 = vld [vmem:[%s1801_s17 + $0x2f0] sm:$0xff] }
  0x3b   : > { %271 = vst [vmem:[%s1806_s18 + $0x1e0] sm:$0xff] %v270_v60  ;;  %273 = vst [vmem:[%s1806_s18 + $0x1e8] sm:$0xff] %v272_v61  ;;  %v276_v63 = vld [vmem:[%s1801_s17 + $0x2f8] sm:$0xff] }
  0x3c   : > { %275 = vst [vmem:[%s1806_s18 + $0x1f0] sm:$0xff] %v274_v62  ;;  %277 = vst [vmem:[%s1806_s18 + $0x1f8] sm:$0xff] %v276_v63 }
  0x3d PF: > { %283 = sbr.rel (!%p1770_p3) target bundleno = 100 (0x64), region = 43  ;;  %s285_s21 = sand.u32 (%p1770_p3), 1, %s1679_s11  }
  0x3e   : > { %s1522_s25 = sshll.u32 (%p1770_p3), %s1691_s14, 5  ;;  %s1521_s26 = sshll.u32 (%p1770_p3), %s285_s21, 9 }
  0x3f   : > { %s1523_s27 = sshll.u32 (%p1770_p3), %s1695_s15, 7  ;;  %s1946_s22 = scalar_lea.vmem (%p1770_p3), [#allocation3], %s1521_s26 }
  0x40   : > { %s290_s29 = sadd.s32 (%p1770_p3), %s1523_s27, %s1522_s25 }
  0x41   : > { %s1524_s30 = sshll.u32 (%p1770_p3), %s290_s29, 3 }
  0x42   : > { %s1941_s5 = scalar_lea.vmem %s2682_s1, %s1524_s30 }
  0x43   : > { %v305_v0 = vld [vmem:[%s1941_s5] sm:$0xff]  ;;  %v307_v1 = vld [vmem:[%s1941_s5 + $0x8] sm:$0xff]  ;;  %v309_v2 = vld [vmem:[%s1941_s5 + $0x10] sm:$0xff] }
  0x44   : > { %306 = vst [vmem:[%s1946_s22] sm:$0xff] %v305_v0  ;;  %308 = vst [vmem:[%s1946_s22 + $0x8] sm:$0xff] %v307_v1  ;;  %v311_v3 = vld [vmem:[%s1941_s5 + $0x18] sm:$0xff]  ;;  %v313_v4 = vld [vmem:[%s1941_s5 + $0x20] sm:$0xff] }
  0x45   : > { %310 = vst [vmem:[%s1946_s22 + $0x10] sm:$0xff] %v309_v2  ;;  %v315_v5 = vld [vmem:[%s1941_s5 + $0x28] sm:$0xff]  ;;  %312 = vst [vmem:[%s1946_s22 + $0x18] sm:$0xff] %v311_v3  ;;  %v317_v6 = vld [vmem:[%s1941_s5 + $0x30] sm:$0xff] }
  0x46   : > { %314 = vst [vmem:[%s1946_s22 + $0x20] sm:$0xff] %v313_v4  ;;  %316 = vst [vmem:[%s1946_s22 + $0x28] sm:$0xff] %v315_v5  ;;  %v319_v7 = vld [vmem:[%s1941_s5 + $0x38] sm:$0xff]  ;;  %v321_v8 = vld [vmem:[%s1941_s5 + $0x40] sm:$0xff] }
  0x47   : > { %318 = vst [vmem:[%s1946_s22 + $0x30] sm:$0xff] %v317_v6  ;;  %320 = vst [vmem:[%s1946_s22 + $0x38] sm:$0xff] %v319_v7  ;;  %v323_v9 = vld [vmem:[%s1941_s5 + $0x48] sm:$0xff]  ;;  %v325_v10 = vld [vmem:[%s1941_s5 + $0x50] sm:$0xff] }
  0x48   : > { %322 = vst [vmem:[%s1946_s22 + $0x40] sm:$0xff] %v321_v8  ;;  %v327_v11 = vld [vmem:[%s1941_s5 + $0x58] sm:$0xff]  ;;  %324 = vst [vmem:[%s1946_s22 + $0x48] sm:$0xff] %v323_v9  ;;  %v329_v12 = vld [vmem:[%s1941_s5 + $0x60] sm:$0xff] }
  0x49   : > { %326 = vst [vmem:[%s1946_s22 + $0x50] sm:$0xff] %v325_v10  ;;  %328 = vst [vmem:[%s1946_s22 + $0x58] sm:$0xff] %v327_v11  ;;  %v331_v13 = vld [vmem:[%s1941_s5 + $0x68] sm:$0xff]  ;;  %v333_v14 = vld [vmem:[%s1941_s5 + $0x70] sm:$0xff] }
  0x4a   : > { %330 = vst [vmem:[%s1946_s22 + $0x60] sm:$0xff] %v329_v12  ;;  %332 = vst [vmem:[%s1946_s22 + $0x68] sm:$0xff] %v331_v13  ;;  %v335_v15 = vld [vmem:[%s1941_s5 + $0x78] sm:$0xff]  ;;  %v337_v16 = vld [vmem:[%s1941_s5 + $0x80] sm:$0xff] }
  0x4b   : > { %334 = vst [vmem:[%s1946_s22 + $0x70] sm:$0xff] %v333_v14  ;;  %v339_v17 = vld [vmem:[%s1941_s5 + $0x88] sm:$0xff]  ;;  %336 = vst [vmem:[%s1946_s22 + $0x78] sm:$0xff] %v335_v15  ;;  %v341_v18 = vld [vmem:[%s1941_s5 + $0x90] sm:$0xff] }
  0x4c   : > { %338 = vst [vmem:[%s1946_s22 + $0x80] sm:$0xff] %v337_v16  ;;  %340 = vst [vmem:[%s1946_s22 + $0x88] sm:$0xff] %v339_v17  ;;  %v343_v19 = vld [vmem:[%s1941_s5 + $0x98] sm:$0xff]  ;;  %v345_v20 = vld [vmem:[%s1941_s5 + $0xa0] sm:$0xff] }
  0x4d   : > { %342 = vst [vmem:[%s1946_s22 + $0x90] sm:$0xff] %v341_v18  ;;  %344 = vst [vmem:[%s1946_s22 + $0x98] sm:$0xff] %v343_v19  ;;  %v347_v21 = vld [vmem:[%s1941_s5 + $0xa8] sm:$0xff]  ;;  %v349_v22 = vld [vmem:[%s1941_s5 + $0xb0] sm:$0xff] }
  0x4e   : > { %346 = vst [vmem:[%s1946_s22 + $0xa0] sm:$0xff] %v345_v20  ;;  %v351_v23 = vld [vmem:[%s1941_s5 + $0xb8] sm:$0xff]  ;;  %348 = vst [vmem:[%s1946_s22 + $0xa8] sm:$0xff] %v347_v21  ;;  %v353_v24 = vld [vmem:[%s1941_s5 + $0xc0] sm:$0xff] }
  0x4f   : > { %350 = vst [vmem:[%s1946_s22 + $0xb0] sm:$0xff] %v349_v22  ;;  %352 = vst [vmem:[%s1946_s22 + $0xb8] sm:$0xff] %v351_v23  ;;  %v355_v25 = vld [vmem:[%s1941_s5 + $0xc8] sm:$0xff]  ;;  %v357_v26 = vld [vmem:[%s1941_s5 + $0xd0] sm:$0xff] }
  0x50   : > { %354 = vst [vmem:[%s1946_s22 + $0xc0] sm:$0xff] %v353_v24  ;;  %356 = vst [vmem:[%s1946_s22 + $0xc8] sm:$0xff] %v355_v25  ;;  %v359_v27 = vld [vmem:[%s1941_s5 + $0xd8] sm:$0xff]  ;;  %v361_v28 = vld [vmem:[%s1941_s5 + $0xe0] sm:$0xff] }
  0x51   : > { %358 = vst [vmem:[%s1946_s22 + $0xd0] sm:$0xff] %v357_v26  ;;  %v363_v29 = vld [vmem:[%s1941_s5 + $0xe8] sm:$0xff]  ;;  %360 = vst [vmem:[%s1946_s22 + $0xd8] sm:$0xff] %v359_v27  ;;  %v365_v30 = vld [vmem:[%s1941_s5 + $0xf0] sm:$0xff] }
  0x52   : > { %362 = vst [vmem:[%s1946_s22 + $0xe0] sm:$0xff] %v361_v28  ;;  %364 = vst [vmem:[%s1946_s22 + $0xe8] sm:$0xff] %v363_v29  ;;  %v367_v31 = vld [vmem:[%s1941_s5 + $0xf8] sm:$0xff]  ;;  %v369_v32 = vld [vmem:[%s1941_s5 + $0x200] sm:$0xff] }
  0x53   : > { %366 = vst [vmem:[%s1946_s22 + $0xf0] sm:$0xff] %v365_v30  ;;  %368 = vst [vmem:[%s1946_s22 + $0xf8] sm:$0xff] %v367_v31  ;;  %v371_v33 = vld [vmem:[%s1941_s5 + $0x208] sm:$0xff]  ;;  %v373_v34 = vld [vmem:[%s1941_s5 + $0x210] sm:$0xff] }
  0x54   : > { %370 = vst [vmem:[%s1946_s22 + $0x100] sm:$0xff] %v369_v32  ;;  %v375_v35 = vld [vmem:[%s1941_s5 + $0x218] sm:$0xff]  ;;  %372 = vst [vmem:[%s1946_s22 + $0x108] sm:$0xff] %v371_v33  ;;  %v377_v36 = vld [vmem:[%s1941_s5 + $0x220] sm:$0xff] }
  0x55   : > { %374 = vst [vmem:[%s1946_s22 + $0x110] sm:$0xff] %v373_v34  ;;  %376 = vst [vmem:[%s1946_s22 + $0x118] sm:$0xff] %v375_v35  ;;  %v379_v37 = vld [vmem:[%s1941_s5 + $0x228] sm:$0xff]  ;;  %v381_v38 = vld [vmem:[%s1941_s5 + $0x230] sm:$0xff] }
  0x56   : > { %378 = vst [vmem:[%s1946_s22 + $0x120] sm:$0xff] %v377_v36  ;;  %380 = vst [vmem:[%s1946_s22 + $0x128] sm:$0xff] %v379_v37  ;;  %v383_v39 = vld [vmem:[%s1941_s5 + $0x238] sm:$0xff]  ;;  %v385_v40 = vld [vmem:[%s1941_s5 + $0x240] sm:$0xff] }
  0x57   : > { %382 = vst [vmem:[%s1946_s22 + $0x130] sm:$0xff] %v381_v38  ;;  %v387_v41 = vld [vmem:[%s1941_s5 + $0x248] sm:$0xff]  ;;  %384 = vst [vmem:[%s1946_s22 + $0x138] sm:$0xff] %v383_v39  ;;  %v389_v42 = vld [vmem:[%s1941_s5 + $0x250] sm:$0xff] }
  0x58   : > { %386 = vst [vmem:[%s1946_s22 + $0x140] sm:$0xff] %v385_v40  ;;  %388 = vst [vmem:[%s1946_s22 + $0x148] sm:$0xff] %v387_v41  ;;  %v391_v43 = vld [vmem:[%s1941_s5 + $0x258] sm:$0xff]  ;;  %v393_v44 = vld [vmem:[%s1941_s5 + $0x260] sm:$0xff] }
  0x59   : > { %390 = vst [vmem:[%s1946_s22 + $0x150] sm:$0xff] %v389_v42  ;;  %392 = vst [vmem:[%s1946_s22 + $0x158] sm:$0xff] %v391_v43  ;;  %v395_v45 = vld [vmem:[%s1941_s5 + $0x268] sm:$0xff]  ;;  %v397_v46 = vld [vmem:[%s1941_s5 + $0x270] sm:$0xff] }
  0x5a   : > { %394 = vst [vmem:[%s1946_s22 + $0x160] sm:$0xff] %v393_v44  ;;  %v399_v47 = vld [vmem:[%s1941_s5 + $0x278] sm:$0xff]  ;;  %396 = vst [vmem:[%s1946_s22 + $0x168] sm:$0xff] %v395_v45  ;;  %v401_v48 = vld [vmem:[%s1941_s5 + $0x280] sm:$0xff] }
  0x5b   : > { %398 = vst [vmem:[%s1946_s22 + $0x170] sm:$0xff] %v397_v46  ;;  %400 = vst [vmem:[%s1946_s22 + $0x178] sm:$0xff] %v399_v47  ;;  %v403_v49 = vld [vmem:[%s1941_s5 + $0x288] sm:$0xff]  ;;  %v405_v50 = vld [vmem:[%s1941_s5 + $0x290] sm:$0xff] }
  0x5c   : > { %402 = vst [vmem:[%s1946_s22 + $0x180] sm:$0xff] %v401_v48  ;;  %404 = vst [vmem:[%s1946_s22 + $0x188] sm:$0xff] %v403_v49  ;;  %v407_v51 = vld [vmem:[%s1941_s5 + $0x298] sm:$0xff]  ;;  %v409_v52 = vld [vmem:[%s1941_s5 + $0x2a0] sm:$0xff] }
  0x5d   : > { %406 = vst [vmem:[%s1946_s22 + $0x190] sm:$0xff] %v405_v50  ;;  %v411_v53 = vld [vmem:[%s1941_s5 + $0x2a8] sm:$0xff]  ;;  %408 = vst [vmem:[%s1946_s22 + $0x198] sm:$0xff] %v407_v51  ;;  %v413_v54 = vld [vmem:[%s1941_s5 + $0x2b0] sm:$0xff] }
  0x5e   : > { %410 = vst [vmem:[%s1946_s22 + $0x1a0] sm:$0xff] %v409_v52  ;;  %412 = vst [vmem:[%s1946_s22 + $0x1a8] sm:$0xff] %v411_v53  ;;  %v415_v55 = vld [vmem:[%s1941_s5 + $0x2b8] sm:$0xff]  ;;  %v417_v56 = vld [vmem:[%s1941_s5 + $0x2c0] sm:$0xff] }
  0x5f   : > { %414 = vst [vmem:[%s1946_s22 + $0x1b0] sm:$0xff] %v413_v54  ;;  %416 = vst [vmem:[%s1946_s22 + $0x1b8] sm:$0xff] %v415_v55  ;;  %v419_v57 = vld [vmem:[%s1941_s5 + $0x2c8] sm:$0xff]  ;;  %v421_v58 = vld [vmem:[%s1941_s5 + $0x2d0] sm:$0xff] }
  0x60   : > { %418 = vst [vmem:[%s1946_s22 + $0x1c0] sm:$0xff] %v417_v56  ;;  %v423_v59 = vld [vmem:[%s1941_s5 + $0x2d8] sm:$0xff]  ;;  %420 = vst [vmem:[%s1946_s22 + $0x1c8] sm:$0xff] %v419_v57  ;;  %v425_v60 = vld [vmem:[%s1941_s5 + $0x2e0] sm:$0xff] }
  0x61   : > { %422 = vst [vmem:[%s1946_s22 + $0x1d0] sm:$0xff] %v421_v58  ;;  %424 = vst [vmem:[%s1946_s22 + $0x1d8] sm:$0xff] %v423_v59  ;;  %v427_v61 = vld [vmem:[%s1941_s5 + $0x2e8] sm:$0xff]  ;;  %v429_v62 = vld [vmem:[%s1941_s5 + $0x2f0] sm:$0xff] }
  0x62   : > { %426 = vst [vmem:[%s1946_s22 + $0x1e0] sm:$0xff] %v425_v60  ;;  %428 = vst [vmem:[%s1946_s22 + $0x1e8] sm:$0xff] %v427_v61  ;;  %v431_v63 = vld [vmem:[%s1941_s5 + $0x2f8] sm:$0xff] }
  0x63   : > { %430 = vst [vmem:[%s1946_s22 + $0x1f0] sm:$0xff] %v429_v62  ;;  %432 = vst [vmem:[%s1946_s22 + $0x1f8] sm:$0xff] %v431_v63 }
  0x64 PF: > { %p1525_p12 = scmp.ge.s32.totalorder %s1699_s16, 1  ;;  %p437_p13 = scmp.lt.s32.totalorder %s1699_s16, 5 }
  0x66   : > { %p438_p0 = pnand %p1525_p12, %p437_p13 }
  0x68   : > { %441 = sbr.rel (%p438_p0) target bundleno = 285 (0x11d), region = 66 }
  0x6d   : > { %s2076_s6 = sand.u32 1, %s1675_s10   ;;  %v1701_v10 = vmov 1966171168   ;;  %v1196_v12 = vlaneseq  ;;  %vm900_vm0 = vcmask 1043456   ;;  %s1530_s21 = sshll.u32 %s1683_s12, 5 }
  0x6e   : > { %s1526_s7 = sshll.u32 %s2076_s6, 9  ;;  %v2091_v11 = vunpack.c.l.s4 %v1701_v10  ;;  %s1528_s18 = sshll.u32 %s2076_s6, 5 }
  0x6f   : > { %s2079_s8 = scalar_lea.vmem [#allocation2], %s1526_s7  ;;  %s2096_s17 = scalar_lea.vmem [#allocation3], %s1526_s7  ;;  %v2116_v34 = vshrl.u32 %v1196_v12, 7 }
  0x70   : > { %v482_v0 = vld [vmem:[%s2079_s8] sm:$0xff]  ;;  %v483_v1 = vld [vmem:[%s2079_s8 + $0x8] sm:$0xff]  ;;  %v484_v2 = vld [vmem:[%s2079_s8 + $0x10] sm:$0xff]  ;;  %2688 = vst [vmem:[#allocation7_spill] sm:$0xff] %v2091_v11  ;;  %s1531_s25 = sshll.u32 %s1687_s13, 6  ;;  %s475_s26 = scalar_lea.vmem [#allocation4], %s1528_s18 }
  0x71   : > { %v485_v3 = vld [vmem:[%s2079_s8 + $0x18] sm:$0xff]  ;;  %v486_v4 = vld [vmem:[%s2079_s8 + $0x20] sm:$0xff]  ;;  %v487_v5 = vld [vmem:[%s2079_s8 + $0x28] sm:$0xff]  ;;  %2689 = vst [vmem:[#allocation8_spill] sm:$0xff] %v2116_v34  ;;  %s1406_s27 = sadd.s32 %s1531_s25, %s1530_s21  ;;  %s1410_s13 = sshll.u32 %s475_s26, 4  ;;  %s1411_s13 = int_to_ptr.vmem [resolvable:$true] %s1410_s13 }
  0x72   : > { %v488_v6 = vld [vmem:[%s2079_s8 + $0x30] sm:$0xff]  ;;  %v489_v7 = vld [vmem:[%s2079_s8 + $0x38] sm:$0xff]  ;;  %v490_v8 = vld [vmem:[%s2079_s8 + $0x40] sm:$0xff]  ;;  %s1532_s12 = sshll.u32 %s1406_s27, 4  ;;  %s1394_s4 = scalar_lea.sflag [#allocation5], %s2076_s6 }
  0x73   : > { %v491_v9 = vld [vmem:[%s2079_s8 + $0x48] sm:$0xff]  ;;  %v492_v13 = vld [vmem:[%s2079_s8 + $0x50] sm:$0xff]  ;;  %v493_v14 = vld [vmem:[%s2079_s8 + $0x58] sm:$0xff]  ;;  %s1408_s3 = scalar_lea.hbm %s2683_s2, %s1532_s12  ;;  %s1607_s5 = scalar_lea.vmem %s1411_s13, 512 }
  0x74   : > { %v494_v15 = vld [vmem:[%s2079_s8 + $0x60] sm:$0xff]  ;;  %v495_v17 = vld [vmem:[%s2079_s8 + $0x68] sm:$0xff]  ;;  %v496_v18 = vld [vmem:[%s2079_s8 + $0x70] sm:$0xff]  ;;  %p1608_p1 = scmp.ne.s32.totalorder %s1411_s13, %s1607_s5  ;;  %s1702_s22 = smov [#allocation4]  }
  0x75   : > { %v516_v16 = vld [vmem:[%s2096_s17] sm:$0xff]  ;;  %v497_v19 = vld [vmem:[%s2079_s8 + $0x78] sm:$0xff]  ;;  %v517_v20 = vld [vmem:[%s2096_s17 + $0x8] sm:$0xff]  ;;  %s1611_s7 = sshll.u32 %s1702_s22, 4  ;;  %s1612_s7 = int_to_ptr.vmem [resolvable:$false] %s1611_s7 }
  0x76   : > { %v518_v21 = vld [vmem:[%s2096_s17 + $0x10] sm:$0xff]  ;;  %v519_v22 = vld [vmem:[%s2096_s17 + $0x18] sm:$0xff]  ;;  %v548_v23 = vmul.f32 %v516_v16, %v482_v0  ;;  %v498_v25 = vld [vmem:[%s2079_s8 + $0x80] sm:$0xff]  ;;  %v549_v31 = vmul.f32 %v517_v20, %v483_v1  ;;  %p1609_p2 = pnand %p1608_p1, %p1778_p8  ;;  %p1614_p4 = scmp.lt.s32.totalorder %s1411_s13, %s1612_s7 }
  0x77   : > { %v499_v26 = vld [vmem:[%s2079_s8 + $0x88] sm:$0xff]  ;;  %v500_v27 = vld [vmem:[%s2079_s8 + $0x90] sm:$0xff]  ;;  %v520_v28 = vld [vmem:[%s2096_s17 + $0x20] sm:$0xff]  ;;  %v2112_v32 = vmul.f32 %v518_v21, %v484_v2  ;;  %v2114_v33 = vmul.f32 %v519_v22, %v485_v3 }
  0x78   : > { %v521_v29 = vld [vmem:[%s2096_s17 + $0x28] sm:$0xff]  ;;  %v522_v30 = vld [vmem:[%s2096_s17 + $0x30] sm:$0xff]  ;;  %v501_v35 = vld [vmem:[%s2079_s8 + $0x98] sm:$0xff]  ;;  %v2124_v41 = vmul.f32 %v520_v28, %v486_v4  ;;  %v580_v44 = vrot.slane %v548_v23, 4  ;;  %v586_v54 = vrot.slane %v549_v31, 4  ;;  %p1610_p3 = pneg %p1609_p2 }
  0x79   : > { %v502_v36 = vld [vmem:[%s2079_s8 + $0xa0] sm:$0xff]  ;;  %v503_v37 = vld [vmem:[%s2079_s8 + $0xa8] sm:$0xff]  ;;  %v523_v38 = vld [vmem:[%s2096_s17 + $0x38] sm:$0xff]  ;;  %v2126_v42 = vmul.f32 %v521_v29, %v487_v5  ;;  %v2128_v43 = vmul.f32 %v522_v30, %v488_v6 }
  0x7a   : > { %v524_v39 = vld [vmem:[%s2096_s17 + $0x40] sm:$0xff]  ;;  %v525_v40 = vld [vmem:[%s2096_s17 + $0x48] sm:$0xff]  ;;  %v504_v45 = vld [vmem:[%s2079_s8 + $0xb0] sm:$0xff]  ;;  %v2136_v51 = vmul.f32 %v523_v38, %v489_v7  ;;  %v581_v0 = vadd.f32 %v580_v44, %v548_v23  ;;  %v587_v10 = vadd.f32 %v586_v54, %v549_v31 }
  0x7b   : > { %v505_v46 = vld [vmem:[%s2079_s8 + $0xb8] sm:$0xff]  ;;  %v506_v47 = vld [vmem:[%s2079_s8 + $0xc0] sm:$0xff]  ;;  %v526_v48 = vld [vmem:[%s2096_s17 + $0x50] sm:$0xff]  ;;  %v2138_v52 = vmul.f32 %v524_v39, %v490_v8  ;;  %v2140_v53 = vmul.f32 %v525_v40, %v491_v9 }
  0x7c   : > { %v527_v49 = vld [vmem:[%s2096_s17 + $0x58] sm:$0xff]  ;;  %v528_v50 = vld [vmem:[%s2096_s17 + $0x60] sm:$0xff]  ;;  %v507_v55 = vld [vmem:[%s2079_s8 + $0xc8] sm:$0xff]  ;;  %v2148_v61 = vmul.f32 %v526_v48, %v492_v13 }
  0x7d   : > { %v508_v56 = vld [vmem:[%s2079_s8 + $0xd0] sm:$0xff]  ;;  %v509_v57 = vld [vmem:[%s2079_s8 + $0xd8] sm:$0xff]  ;;  %v529_v58 = vld [vmem:[%s2096_s17 + $0x68] sm:$0xff]  ;;  %v2150_v62 = vmul.f32 %v527_v49, %v493_v14  ;;  %v2152_v63 = vmul.f32 %v528_v50, %v494_v15 }
  0x7e   : > { %v530_v59 = vld [vmem:[%s2096_s17 + $0x70] sm:$0xff]  ;;  %v531_v60 = vld [vmem:[%s2096_s17 + $0x78] sm:$0xff]  ;;  %v510_v1 = vld [vmem:[%s2079_s8 + $0xe0] sm:$0xff]  ;;  %v2160_v7 = vmul.f32 %v529_v58, %v495_v17  ;;  %v582_v17 = vrot.slane %v581_v0, 2 }
  0x7f   : > { %v511_v2 = vld [vmem:[%s2079_s8 + $0xe8] sm:$0xff]  ;;  %v512_v3 = vld [vmem:[%s2079_s8 + $0xf0] sm:$0xff]  ;;  %v532_v4 = vld [vmem:[%s2096_s17 + $0x80] sm:$0xff]  ;;  %v2162_v8 = vmul.f32 %v530_v59, %v496_v18  ;;  %v2164_v9 = vmul.f32 %v531_v60, %v497_v19 }
  0x80   : > { %v533_v5 = vld [vmem:[%s2096_s17 + $0x88] sm:$0xff]  ;;  %v534_v6 = vld [vmem:[%s2096_s17 + $0x90] sm:$0xff]  ;;  %v513_v12 = vld [vmem:[%s2079_s8 + $0xf8] sm:$0xff]  ;;  %v2170_v16 = vmul.f32 %v532_v4, %v498_v25  ;;  %v588_v25 = vrot.slane %v587_v10, 2  ;;  %v583_v40 = vadd.f32 %v582_v17, %v581_v0  ;;  %v592_v0 = vrot.slane %v2112_v32, 4 }
  0x81   : > { %v535_v13 = vld [vmem:[%s2096_s17 + $0x98] sm:$0xff]  ;;  %v536_v14 = vld [vmem:[%s2096_s17 + $0xa0] sm:$0xff]  ;;  %v537_v15 = vld [vmem:[%s2096_s17 + $0xa8] sm:$0xff]  ;;  %v2172_v20 = vmul.f32 %v533_v5, %v499_v26  ;;  %v2174_v21 = vmul.f32 %v534_v6, %v500_v27  ;;  %v610_v4 = vrot.slane %v2126_v42, 4  ;;  %v622_v6 = vrot.slane %v2136_v51, 4 }
  0x82   : > { %v538_v18 = vld [vmem:[%s2096_s17 + $0xb0] sm:$0xff]  ;;  %v539_v19 = vld [vmem:[%s2096_s17 + $0xb8] sm:$0xff]  ;;  %v540_v22 = vld [vmem:[%s2096_s17 + $0xc0] sm:$0xff]  ;;  %v2179_v23 = vmul.f32 %v535_v13, %v501_v35  ;;  %v2181_v28 = vmul.f32 %v536_v14, %v502_v36  ;;  %v2183_v29 = vmul.f32 %v537_v15, %v503_v37  ;;  %v589_v50 = vadd.f32 %v588_v25, %v587_v10 }
  0x83   : > { %v541_v30 = vld [vmem:[%s2096_s17 + $0xc8] sm:$0xff]  ;;  %v542_v26 = vld [vmem:[%s2096_s17 + $0xd0] sm:$0xff]  ;;  %v543_v31 = vld [vmem:[%s2096_s17 + $0xd8] sm:$0xff]  ;;  %v2188_v27 = vmul.f32 %v538_v18, %v504_v45  ;;  %v2190_v38 = vmul.f32 %v539_v19, %v505_v46  ;;  %v2192_v39 = vmul.f32 %v540_v22, %v506_v47  ;;  %v584_v47 = vrot.slane %v583_v40, 1 }
  0x84   : > { %v544_v44 = vld [vmem:[%s2096_s17 + $0xe0] sm:$0xff]  ;;  %v545_v48 = vld [vmem:[%s2096_s17 + $0xe8] sm:$0xff]  ;;  %v546_v35 = vld [vmem:[%s2096_s17 + $0xf0] sm:$0xff]  ;;  %v2197_v49 = vmul.f32 %v541_v30, %v507_v55  ;;  %v2199_v36 = vmul.f32 %v542_v26, %v508_v56  ;;  %v2201_v37 = vmul.f32 %v543_v31, %v509_v57  ;;  %v590_v60 = vrot.slane %v589_v50, 1 }
  0x85   : > { %v547_v54 = vld [vmem:[%s2096_s17 + $0xf8] sm:$0xff]  ;;  %v2204_v58 = vmul.f32 %v544_v44, %v510_v1  ;;  %v2206_v45 = vmul.f32 %v545_v48, %v511_v2  ;;  %v2208_v46 = vmul.f32 %v546_v35, %v512_v3  ;;  %v598_v55 = vrot.slane %v2114_v33, 4  ;;  %v813_v24 = vld [vmem:[%s2079_s8 + $0x148] sm:$0xf]  ;;  %v850_v34 = vld [vmem:[%s2096_s17 + $0x170] sm:$0xf] }
  0x86   : > { %v2210_v59 = vmul.f32 %v547_v54, %v513_v12  ;;  %v2214_v56 = vadd.f32 %v584_v47, %v583_v40  ;;  %v604_v57 = vrot.slane %v2124_v41, 4  ;;  %v616_v1 = vrot.slane %v2128_v43, 4  ;;  %v849_v11 = vld [vmem:[%s2096_s17 + $0x168] sm:$0xf] }
  0x87   : > { %v2219_v2 = vadd.f32 %v590_v60, %v589_v50  ;;  %v593_v3 = vadd.f32 %v592_v0, %v2112_v32  ;;  %v599_v5 = vadd.f32 %v598_v55, %v2114_v33  ;;  %v611_v12 = vadd.f32 %v610_v4, %v2126_v42 }
  0x88   : > { %v605_v10 = vadd.f32 %v604_v57, %v2124_v41  ;;  %v617_v13 = vadd.f32 %v616_v1, %v2128_v43  ;;  %v628_v14 = vrot.slane %v2138_v52, 4  ;;  %v623_v18 = vadd.f32 %v622_v6, %v2136_v51 }
  0x89   : > { %v594_v15 = vrot.slane %v593_v3, 2  ;;  %v600_v17 = vrot.slane %v599_v5, 2  ;;  %v634_v19 = vrot.slane %v2140_v53, 4  ;;  %v612_v32 = vrot.slane %v611_v12, 2 }
  0x8a   : > { %v606_v22 = vrot.slane %v605_v10, 2  ;;  %v618_v25 = vrot.slane %v617_v13, 2  ;;  %v629_v33 = vadd.f32 %v628_v14, %v2138_v52  ;;  %v624_v41 = vrot.slane %v623_v18, 2 }
  0x8b   : > { %v595_v30 = vadd.f32 %v594_v15, %v593_v3  ;;  %v601_v26 = vadd.f32 %v600_v17, %v599_v5  ;;  %v635_v42 = vadd.f32 %v634_v19, %v2140_v53  ;;  %v613_v43 = vadd.f32 %v612_v32, %v611_v12 }
  0x8c   : > { %v607_v31 = vadd.f32 %v606_v22, %v605_v10  ;;  %v619_v40 = vadd.f32 %v618_v25, %v617_v13  ;;  %v630_v44 = vrot.slane %v629_v33, 2  ;;  %v625_v50 = vadd.f32 %v624_v41, %v623_v18 }
  0x8d   : > { %v596_v48 = vrot.slane %v595_v30, 1  ;;  %v602_v35 = vrot.slane %v601_v26, 1  ;;  %v636_v51 = vrot.slane %v635_v42, 2  ;;  %v614_v47 = vrot.slane %v613_v43, 1 }
  0x8e   : > { %v608_v54 = vrot.slane %v607_v31, 1  ;;  %v620_v60 = vrot.slane %v619_v40, 1  ;;  %v631_v0 = vadd.f32 %v630_v44, %v629_v33  ;;  %v626_v57 = vrot.slane %v625_v50, 1 }
  0x8f   : > { %v2232_v55 = vadd.f32 %v596_v48, %v595_v30  ;;  %v2234_v52 = vadd.f32 %v602_v35, %v601_v26  ;;  %v637_v4 = vadd.f32 %v636_v51, %v635_v42  ;;  %v2238_v53 = vadd.f32 %v614_v47, %v613_v43 }
  0x90   : > { %v2236_v1 = vadd.f32 %v608_v54, %v607_v31  ;;  %v2240_v3 = vadd.f32 %v620_v60, %v619_v40  ;;  %v632_v5 = vrot.slane %v631_v0, 1  ;;  %v2242_v6 = vadd.f32 %v626_v57, %v625_v50 }
  0x91   : > { %2690 = vst [vmem:[#allocation9_spill] sm:$0xff] %v2232_v55  ;;  %2691 = vst [vmem:[#allocation10_spill] sm:$0xff] %v2234_v52  ;;  %v638_v10 = vrot.slane %v637_v4, 1  ;;  %v640_v12 = vrot.slane %v2148_v61, 4  ;;  %v646_v13 = vrot.slane %v2150_v62, 4  ;;  %v652_v15 = vrot.slane %v2152_v63, 4 }
  0x92   : > { %2692 = vst [vmem:[#allocation11_spill] sm:$0xff] %v2236_v1  ;;  %2693 = vst [vmem:[#allocation12_spill] sm:$0xff] %v2238_v53  ;;  %v2246_v14 = vadd.f32 %v632_v5, %v631_v0  ;;  %v658_v17 = vrot.slane %v2160_v7, 4  ;;  %v664_v18 = vrot.slane %v2162_v8, 4  ;;  %v670_v25 = vrot.slane %v2164_v9, 4 }
  0x93   : > { %2694 = vst [vmem:[#allocation13_spill] sm:$0xff] %v2240_v3  ;;  %2695 = vst [vmem:[#allocation14_spill] sm:$0xff] %v2242_v6  ;;  %v2251_v19 = vadd.f32 %v638_v10, %v637_v4  ;;  %v641_v22 = vadd.f32 %v640_v12, %v2148_v61  ;;  %v647_v32 = vadd.f32 %v646_v13, %v2150_v62  ;;  %v676_v41 = vrot.slane %v2170_v16, 4  ;;  %v865_v1 = vld [vmem:[%s2096_s17 + $0x1e8] sm:$0xf] }
  0x94   : > { %2696 = vst [vmem:[#allocation15_spill] sm:$0xff] %v2246_v14  ;;  %v653_v33 = vadd.f32 %v652_v15, %v2152_v63  ;;  %v659_v30 = vadd.f32 %v658_v17, %v2160_v7  ;;  %v665_v26 = vadd.f32 %v664_v18, %v2162_v8  ;;  %v671_v43 = vadd.f32 %v670_v25, %v2164_v9  ;;  %v866_v52 = vld [vmem:[%s2096_s17 + $0x1f0] sm:$0xf]  ;;  %v867_v55 = vld [vmem:[%s2096_s17 + $0x1f8] sm:$0xf] }
  0x95   : > { %2697 = vst [vmem:[#allocation16_spill] sm:$0xff] %v2251_v19  ;;  %v642_v42 = vrot.slane %v641_v22, 2  ;;  %v648_v31 = vrot.slane %v647_v32, 2  ;;  %v682_v40 = vrot.slane %v2172_v20, 4  ;;  %v677_v62 = vadd.f32 %v676_v41, %v2170_v16  ;;  %v857_v19 = vld [vmem:[%s2096_s17 + $0x1a8] sm:$0xf] }
  0x96   : > { %v654_v44 = vrot.slane %v653_v33, 2  ;;  %v660_v61 = vrot.slane %v659_v30, 2  ;;  %v666_v48 = vrot.slane %v665_v26, 2  ;;  %v672_v63 = vrot.slane %v671_v43, 2 }
  0x97   : > { %v643_v35 = vadd.f32 %v642_v42, %v641_v22  ;;  %v649_v50 = vadd.f32 %v648_v31, %v647_v32  ;;  %v683_v7 = vadd.f32 %v682_v40, %v2172_v20  ;;  %v678_v47 = vrot.slane %v677_v62, 2 }
  0x98   : > { %v655_v51 = vadd.f32 %v654_v44, %v653_v33  ;;  %v661_v8 = vadd.f32 %v660_v61, %v659_v30  ;;  %v667_v54 = vadd.f32 %v666_v48, %v665_v26  ;;  %v673_v57 = vadd.f32 %v672_v63, %v671_v43 }
  0x99   : > { %v644_v60 = vrot.slane %v643_v35, 1  ;;  %v650_v0 = vrot.slane %v649_v50, 1  ;;  %v684_v9 = vrot.slane %v683_v7, 2  ;;  %v679_v12 = vadd.f32 %v678_v47, %v677_v62 }
  0x9a   : > { %v656_v4 = vrot.slane %v655_v51, 1  ;;  %v662_v5 = vrot.slane %v661_v8, 1  ;;  %v668_v10 = vrot.slane %v667_v54, 1  ;;  %v674_v15 = vrot.slane %v673_v57, 1 }
  0x9b   : > { %v2264_v13 = vadd.f32 %v644_v60, %v643_v35  ;;  %v2266_v16 = vadd.f32 %v650_v0, %v649_v50  ;;  %v685_v17 = vadd.f32 %v684_v9, %v683_v7  ;;  %v680_v32 = vrot.slane %v679_v12, 1 }
  0x9c   : > { %v2268_v18 = vadd.f32 %v656_v4, %v655_v51  ;;  %v2270_v20 = vadd.f32 %v662_v5, %v661_v8  ;;  %v2272_v22 = vadd.f32 %v668_v10, %v667_v54  ;;  %v2274_v25 = vadd.f32 %v674_v15, %v673_v57 }
  0x9d   : > { %2698 = vst [vmem:[#allocation17_spill] sm:$0xff] %v2264_v13  ;;  %2699 = vst [vmem:[#allocation18_spill] sm:$0xff] %v2266_v16  ;;  %v686_v33 = vrot.slane %v685_v17, 1  ;;  %v688_v30 = vrot.slane %v2174_v21, 4  ;;  %v694_v26 = vrot.slane %v2179_v23, 4  ;;  %v2278_v41 = vadd.f32 %v680_v32, %v679_v12 }
  0x9e   : > { %2700 = vst [vmem:[#allocation19_spill] sm:$0xff] %v2268_v18  ;;  %2701 = vst [vmem:[#allocation20_spill] sm:$0xff] %v2270_v20  ;;  %v700_v42 = vrot.slane %v2181_v28, 4  ;;  %v706_v31 = vrot.slane %v2183_v29, 4  ;;  %v712_v43 = vrot.slane %v2188_v27, 4  ;;  %v718_v48 = vrot.slane %v2190_v38, 4 }
  0x9f   : > { %2702 = vst [vmem:[#allocation21_spill] sm:$0xff] %v2272_v22  ;;  %2703 = vst [vmem:[#allocation22_spill] sm:$0xff] %v2274_v25  ;;  %v2283_v40 = vadd.f32 %v686_v33, %v685_v17  ;;  %v689_v44 = vadd.f32 %v688_v30, %v2174_v21  ;;  %v695_v61 = vadd.f32 %v694_v26, %v2179_v23  ;;  %v724_v63 = vrot.slane %v2192_v39, 4  ;;  %v825_v25 = vld [vmem:[%s2079_s8 + $0x1a8] sm:$0xf] }
  0xa0   : > { %2704 = vst [vmem:[#allocation23_spill] sm:$0xff] %v2278_v41  ;;  %v701_v62 = vadd.f32 %v700_v42, %v2181_v28  ;;  %v707_v35 = vadd.f32 %v706_v31, %v2183_v29  ;;  %v713_v50 = vadd.f32 %v712_v43, %v2188_v27  ;;  %v719_v8 = vadd.f32 %v718_v48, %v2190_v38  ;;  %v804_v48 = vld [vmem:[%s2079_s8 + $0x100] sm:$0xf]  ;;  %v826_v22 = vld [vmem:[%s2079_s8 + $0x1b0] sm:$0xf] }
  0xa1   : > { %2705 = vst [vmem:[#allocation24_spill] sm:$0xff] %v2283_v40  ;;  %v690_v7 = vrot.slane %v689_v44, 2  ;;  %v696_v51 = vrot.slane %v695_v61, 2  ;;  %v730_v54 = vrot.slane %v2197_v49, 4  ;;  %v725_v23 = vadd.f32 %v724_v63, %v2192_v39  ;;  %v824_v41 = vld [vmem:[%s2079_s8 + $0x1a0] sm:$0xf] }
  0xa2   : > { %v702_v47 = vrot.slane %v701_v62, 2  ;;  %v708_v21 = vrot.slane %v707_v35, 2  ;;  %v714_v60 = vrot.slane %v713_v50, 2  ;;  %v720_v28 = vrot.slane %v719_v8, 2  ;;  %v827_v20 = vld [vmem:[%s2079_s8 + $0x1b8] sm:$0xf] }
  0xa3   : > { %v691_v0 = vadd.f32 %v690_v7, %v689_v44  ;;  %v697_v57 = vadd.f32 %v696_v51, %v695_v61  ;;  %v731_v29 = vadd.f32 %v730_v54, %v2197_v49  ;;  %v726_v5 = vrot.slane %v725_v23, 2  ;;  %v806_v51 = vld [vmem:[%s2079_s8 + $0x110] sm:$0xf]  ;;  %v855_v16 = vld [vmem:[%s2096_s17 + $0x198] sm:$0xf] }
  0xa4   : > { %v703_v9 = vadd.f32 %v702_v47, %v701_v62  ;;  %v709_v27 = vadd.f32 %v708_v21, %v707_v35  ;;  %v715_v4 = vadd.f32 %v714_v60, %v713_v50  ;;  %v721_v38 = vadd.f32 %v720_v28, %v719_v8  ;;  %v805_v62 = vld [vmem:[%s2079_s8 + $0x108] sm:$0xf]  ;;  %v836_v8 = vld [vmem:[%s2096_s17 + $0x100] sm:$0xf]  ;;  %v854_v18 = vld [vmem:[%s2096_s17 + $0x190] sm:$0xf] }
  0xa5   : > { %v692_v10 = vrot.slane %v691_v0, 1  ;;  %v698_v12 = vrot.slane %v697_v57, 1  ;;  %v732_v15 = vrot.slane %v731_v29, 2  ;;  %v727_v39 = vadd.f32 %v726_v5, %v725_v23  ;;  %v837_v23 = vld [vmem:[%s2096_s17 + $0x108] sm:$0xf] }
  0xa6   : > { %v704_v17 = vrot.slane %v703_v9, 1  ;;  %v710_v32 = vrot.slane %v709_v27, 1  ;;  %v716_v33 = vrot.slane %v715_v4, 1  ;;  %v722_v49 = vrot.slane %v721_v38, 1  ;;  %v856_v13 = vld [vmem:[%s2096_s17 + $0x1a0] sm:$0xf] }
  0xa7   : > { %v2296_v30 = vadd.f32 %v692_v10, %v691_v0  ;;  %v2298_v26 = vadd.f32 %v698_v12, %v697_v57  ;;  %v733_v42 = vadd.f32 %v732_v15, %v731_v29  ;;  %v728_v61 = vrot.slane %v727_v39, 1  ;;  %v808_v12 = vld [vmem:[%s2079_s8 + $0x120] sm:$0xf]  ;;  %v839_v15 = vld [vmem:[%s2096_s17 + $0x118] sm:$0xf] }
  0xa8   : > { %v2300_v31 = vadd.f32 %v704_v17, %v703_v9  ;;  %v2302_v43 = vadd.f32 %v710_v32, %v709_v27  ;;  %v2304_v44 = vadd.f32 %v716_v33, %v715_v4  ;;  %v2308_v35 = vadd.f32 %v722_v49, %v721_v38  ;;  %v807_v9 = vld [vmem:[%s2079_s8 + $0x118] sm:$0xf]  ;;  %v838_v27 = vld [vmem:[%s2096_s17 + $0x110] sm:$0xf]  ;;  %v809_v38 = vld [vmem:[%s2079_s8 + $0x128] sm:$0xf] }
  0xa9   : > { %2706 = vst [vmem:[#allocation25_spill] sm:$0xff] %v2296_v30  ;;  %2707 = vst [vmem:[#allocation26_spill] sm:$0xff] %v2298_v26  ;;  %v734_v50 = vrot.slane %v733_v42, 1  ;;  %v736_v63 = vrot.slane %v2199_v36, 4  ;;  %v742_v7 = vrot.slane %v2201_v37, 4  ;;  %v2314_v54 = vadd.f32 %v728_v61, %v727_v39 }
  0xaa   : > { %2708 = vst [vmem:[#allocation27_spill] sm:$0xff] %v2300_v31  ;;  %2709 = vst [vmem:[#allocation28_spill] sm:$0xff] %v2302_v43  ;;  %v748_v47 = vrot.slane %v2204_v58, 4  ;;  %v754_v21 = vrot.slane %v2206_v45, 4  ;;  %v760_v60 = vrot.slane %v2208_v46, 4  ;;  %v766_v29 = vrot.slane %v2210_v59, 4 }
  0xab   : > { %2710 = vst [vmem:[#allocation29_spill] sm:$0xff] %v2304_v44  ;;  %2711 = vst [vmem:[#allocation30_spill] sm:$0xff] %v2308_v35  ;;  %v2320_v0 = vadd.f32 %v734_v50, %v733_v42  ;;  %v737_v57 = vadd.f32 %v736_v63, %v2199_v36  ;;  %v743_v28 = vadd.f32 %v742_v7, %v2201_v37  ;;  %v810_v33 = vld [vmem:[%s2079_s8 + $0x130] sm:$0xf]  ;;  %v841_v39 = vld [vmem:[%s2096_s17 + $0x128] sm:$0xf] }
  0xac   : > { %2712 = vst [vmem:[#allocation31_spill] sm:$0xff] %v2314_v54  ;;  %v749_v4 = vadd.f32 %v748_v47, %v2204_v58  ;;  %v755_v5 = vadd.f32 %v754_v21, %v2206_v45  ;;  %v761_v10 = vadd.f32 %v760_v60, %v2208_v46  ;;  %v2333_v36 = vmul.f32 %v836_v8, %v804_v48  ;;  %v840_v58 = vld [vmem:[%s2096_s17 + $0x120] sm:$0xf]  ;;  %v811_v61 = vld [vmem:[%s2079_s8 + $0x138] sm:$0xf] }
  0xad   : > { %2713 = vst [vmem:[#allocation32_spill] sm:$0xff] %v2320_v0  ;;  %v738_v17 = vrot.slane %v737_v57, 2  ;;  %v744_v37 = vrot.slane %v743_v28, 2  ;;  %v767_v32 = vadd.f32 %v766_v29, %v2210_v59  ;;  %v2339_v45 = vmul.f32 %v837_v23, %v805_v62  ;;  %v842_v48 = vld [vmem:[%s2096_s17 + $0x130] sm:$0xf] }
  0xae   : > { %v750_v49 = vrot.slane %v749_v4, 2  ;;  %v756_v46 = vrot.slane %v755_v5, 2  ;;  %v762_v42 = vrot.slane %v761_v10, 2  ;;  %v2343_v50 = vmul.f32 %v838_v27, %v806_v51  ;;  %v812_v8 = vld [vmem:[%s2079_s8 + $0x140] sm:$0xf] }
  0xaf   : > { %v739_v59 = vadd.f32 %v738_v17, %v737_v57  ;;  %v745_v63 = vadd.f32 %v744_v37, %v743_v28  ;;  %v768_v7 = vrot.slane %v767_v32, 2  ;;  %v843_v47 = vld [vmem:[%s2096_s17 + $0x138] sm:$0xf]  ;;  %v844_v62 = vld [vmem:[%s2096_s17 + $0x140] sm:$0xf]  ;;  %v2348_v21 = vmul.f32 %v839_v15, %v807_v9 }
  0xb0   : > { %v751_v60 = vadd.f32 %v750_v49, %v749_v4  ;;  %v757_v23 = vadd.f32 %v756_v46, %v755_v5  ;;  %v763_v29 = vadd.f32 %v762_v42, %v761_v10  ;;  %v814_v51 = vld [vmem:[%s2079_s8 + $0x150] sm:$0xf]  ;;  %v815_v57 = vld [vmem:[%s2079_s8 + $0x158] sm:$0xf]  ;;  %v845_v28 = vld [vmem:[%s2096_s17 + $0x148] sm:$0xf]  ;;  %v2356_v37 = vmul.f32 %v840_v58, %v808_v12 }
  0xb1   : > { %v846_v27 = vld [vmem:[%s2096_s17 + $0x150] sm:$0xf]  ;;  %v847_v17 = vld [vmem:[%s2096_s17 + $0x158] sm:$0xf]  ;;  %v740_v9 = vrot.slane %v739_v59, 1  ;;  %v746_v4 = vrot.slane %v745_v63, 1  ;;  %v769_v5 = vadd.f32 %v768_v7, %v767_v32  ;;  %v2366_v58 = vmul.f32 %v841_v39, %v809_v38 }
  0xb2   : > { %v816_v10 = vld [vmem:[%s2079_s8 + $0x160] sm:$0xf]  ;;  %v817_v15 = vld [vmem:[%s2079_s8 + $0x168] sm:$0xf]  ;;  %v818_v49 = vld [vmem:[%s2079_s8 + $0x170] sm:$0xf]  ;;  %v2374_v30 = vmul.f32 %v842_v48, %v810_v33  ;;  %v875_v33 = vmul.f32 %v843_v47, %v811_v61  ;;  %v2399_v47 = vmul.f32 %v844_v62, %v812_v8  ;;  %v2412_v14 = vmul.f32 %v846_v27, %v814_v51 }
  0xb3   : > { %v819_v46 = vld [vmem:[%s2079_s8 + $0x178] sm:$0xf]  ;;  %v848_v42 = vld [vmem:[%s2096_s17 + $0x160] sm:$0xf]  ;;  %v752_v0 = vrot.slane %v751_v60, 1  ;;  %v758_v54 = vrot.slane %v757_v23, 1  ;;  %v2376_v38 = vadd.f32 %v740_v9, %v739_v59  ;;  %v2378_v39 = vadd.f32 %v746_v4, %v745_v63 }
  0xb4   : > { %v851_v12 = vld [vmem:[%s2096_s17 + $0x178] sm:$0xf]  ;;  %v764_v32 = vrot.slane %v763_v29, 1  ;;  %v820_v7 = vld [vmem:[%s2079_s8 + $0x180] sm:$0xf]  ;;  %v770_v40 = vrot.slane %v769_v5, 1  ;;  %v2414_v6 = vmul.f32 %v847_v17, %v815_v57  ;;  %v2423_v3 = vmul.f32 %v850_v34, %v818_v49 }
  0xb5   : > { %v821_v35 = vld [vmem:[%s2079_s8 + $0x188] sm:$0xf]  ;;  %v822_v44 = vld [vmem:[%s2079_s8 + $0x190] sm:$0xf]  ;;  %v823_v43 = vld [vmem:[%s2079_s8 + $0x198] sm:$0xf]  ;;  %v2386_v48 = vadd.f32 %v752_v0, %v751_v60  ;;  %v2388_v59 = vadd.f32 %v758_v54, %v757_v23  ;;  %v2425_v53 = vmul.f32 %v851_v12, %v819_v46  ;;  %v2438_v27 = vmul.f32 %v856_v13, %v824_v41 }
  0xb6   : > { %v852_v31 = vld [vmem:[%s2096_s17 + $0x180] sm:$0xf]  ;;  %v853_v26 = vld [vmem:[%s2096_s17 + $0x188] sm:$0xf]  ;;  %2714 = vst [vmem:[#allocation33_spill] sm:$0xff] %v2376_v38  ;;  %2715 = vst [vmem:[#allocation34_spill] sm:$0xff] %v2378_v39  ;;  %v2390_v63 = vadd.f32 %v764_v32, %v763_v29  ;;  %v2401_v0 = vadd.f32 %v770_v40, %v769_v5  ;;  %v2419_v5 = vmul.f32 %v848_v42, %v816_v10 }
  0xb7   : > { %2716 = vst [vmem:[#allocation35_spill] sm:$0xff] %v2386_v48  ;;  %2717 = vst [vmem:[#allocation36_spill] sm:$0xff] %v2388_v59  ;;  %v828_v9 = vld [vmem:[%s2079_s8 + $0x1c0] sm:$0xf]  ;;  %v829_v4 = vld [vmem:[%s2079_s8 + $0x1c8] sm:$0xf]  ;;  %v2410_v48 = vmul.f32 %v845_v28, %v813_v24  ;;  %v2430_v24 = vmul.f32 %v852_v31, %v820_v7  ;;  %v2432_v51 = vmul.f32 %v853_v26, %v821_v35 }
  0xb8   : > { %2718 = vst [vmem:[#allocation37_spill] sm:$0xff] %v2390_v63  ;;  %v830_v39 = vld [vmem:[%s2079_s8 + $0x1d0] sm:$0xf]  ;;  %v831_v38 = vld [vmem:[%s2079_s8 + $0x1d8] sm:$0xf]  ;;  %2719 = vst [vmem:[#allocation38_spill] sm:$0xff] %v2401_v0  ;;  %v2421_v0 = vmul.f32 %v849_v11, %v817_v15  ;;  %v2434_v57 = vmul.f32 %v854_v18, %v822_v44  ;;  %v2436_v28 = vmul.f32 %v855_v16, %v823_v43 }
  0xb9   : > { %v858_v61 = vld [vmem:[%s2096_s17 + $0x1b0] sm:$0xf]  ;;  %v832_v54 = vld [vmem:[%s2079_s8 + $0x1e0] sm:$0xf]  ;;  %v833_v60 = vld [vmem:[%s2079_s8 + $0x1e8] sm:$0xf]  ;;  %v2440_v17 = vmul.f32 %v857_v19, %v825_v25 }
  0xba   : > { %v834_v23 = vld [vmem:[%s2079_s8 + $0x1f0] sm:$0xf]  ;;  %v835_v29 = vld [vmem:[%s2079_s8 + $0x1f8] sm:$0xf]  ;;  %v860_v63 = vld [vmem:[%s2096_s17 + $0x1c0] sm:$0xf]  ;;  %v2442_v11 = vmul.f32 %v858_v61, %v826_v22  ;;  %v2456_v16 = vmul.f32 %v865_v1, %v833_v60 }
  0xbb   : > { %v859_v32 = vld [vmem:[%s2096_s17 + $0x1b8] sm:$0xf]  ;;  %v861_v59 = vld [vmem:[%s2096_s17 + $0x1c8] sm:$0xf]  ;;  %v862_v8 = vld [vmem:[%s2096_s17 + $0x1d0] sm:$0xf]  ;;  %v2446_v10 = vmul.f32 %v860_v63, %v828_v9  ;;  %v2458_v13 = vmul.f32 %v866_v52, %v834_v23  ;;  %v2460_v19 = vmul.f32 %v867_v55, %v835_v29 }
  0xbc   : > { %v863_v62 = vld [vmem:[%s2096_s17 + $0x1d8] sm:$0xf]  ;;  %v864_v40 = vld [vmem:[%s2096_s17 + $0x1e0] sm:$0xf]  ;;  %v2444_v34 = vmul.f32 %v859_v32, %v827_v20  ;;  %v2448_v15 = vmul.f32 %v861_v59, %v829_v4  ;;  %v2450_v31 = vmul.f32 %v862_v8, %v830_v39  ;;  %v901_v20 = vsel %vm900_vm0, %v2333_v36, 0.0  ;;  %s1613_s8 = scalar_lea.vmem %s1612_s7, 1024 }
  0xbd   : > { %v2452_v26 = vmul.f32 %v863_v62, %v831_v38  ;;  %v2454_v18 = vmul.f32 %v864_v40, %v832_v54  ;;  %v908_v22 = vsel %vm900_vm0, %v2339_v45, 0.0  ;;  %v915_v25 = vsel %vm900_vm0, %v2343_v50, 0.0  ;;  %p1615_p5 = scmp.lt.s32.totalorder %s1613_s8, %s1607_s5 }
  0xbe   : > { %v922_v41 = vsel %vm900_vm0, %v2348_v21, 0.0  ;;  %v902_v43 = vrot.slane %v901_v20, 4  ;;  %v909_v44 = vrot.slane %v908_v22, 4  ;;  %v916_v1 = vrot.slane %v915_v25, 4 }
  0xbf   : > { %v923_v35 = vrot.slane %v922_v41, 4  ;;  %v929_v55 = vsel %vm900_vm0, %v2356_v37, 0.0  ;;  %v936_v52 = vsel %vm900_vm0, %v2366_v58, 0.0  ;;  %v943_v36 = vsel %vm900_vm0, %v2374_v30, 0.0  ;;  %p1616_p6 = por %p1615_p5, %p1614_p4 }
  0xc0   : > { %v950_v45 = vsel %vm900_vm0, %v875_v33, 0.0  ;;  %v903_v49 = vadd.f32 %v902_v43, %v901_v20  ;;  %v910_v50 = vadd.f32 %v909_v44, %v908_v22  ;;  %v917_v46 = vadd.f32 %v916_v1, %v915_v25 }
  0xc1   : > { %v924_v42 = vadd.f32 %v923_v35, %v922_v41  ;;  %v930_v21 = vrot.slane %v929_v55, 4  ;;  %v937_v12 = vrot.slane %v936_v52, 4  ;;  %v944_v7 = vrot.slane %v943_v36, 4  ;;  %p1617_p7 = pnand %p1616_p6, %p1610_p3 }
  0xc2   : > { %v951_v38 = vrot.slane %v950_v45, 4  ;;  %v904_v39 = vrot.slane %v903_v49, 2  ;;  %v911_v59 = vrot.slane %v910_v50, 2  ;;  %v918_v63 = vrot.slane %v917_v46, 2 }
  0xc3   : > { %v925_v37 = vrot.slane %v924_v42, 2  ;;  %v931_v9 = vadd.f32 %v930_v21, %v929_v55  ;;  %v938_v4 = vadd.f32 %v937_v12, %v936_v52  ;;  %v945_v58 = vadd.f32 %v944_v7, %v943_v36 }
  0xc4   : > { %v952_v61 = vadd.f32 %v951_v38, %v950_v45  ;;  %v905_v54 = vadd.f32 %v904_v39, %v903_v49  ;;  %v912_v30 = vadd.f32 %v911_v59, %v910_v50  ;;  %v919_v60 = vadd.f32 %v918_v63, %v917_v46 }
  0xc5   : > { %v926_v33 = vadd.f32 %v925_v37, %v924_v42  ;;  %v932_v23 = vrot.slane %v931_v9, 2  ;;  %v939_v29 = vrot.slane %v938_v4, 2  ;;  %v946_v32 = vrot.slane %v945_v58, 2 }
  0xc6   : > { %v953_v8 = vrot.slane %v952_v61, 2  ;;  %v906_v62 = vrot.slane %v905_v54, 1  ;;  %v913_v40 = vrot.slane %v912_v30, 1  ;;  %v920_v20 = vrot.slane %v919_v60, 1 }
  0xc7   : > { %v927_v22 = vrot.slane %v926_v33, 1  ;;  %v933_v25 = vadd.f32 %v932_v23, %v931_v9  ;;  %v940_v41 = vadd.f32 %v939_v29, %v938_v4  ;;  %v947_v43 = vadd.f32 %v946_v32, %v945_v58 }
  0xc8   : > { %v954_v44 = vadd.f32 %v953_v8, %v952_v61  ;;  %v2477_v1 = vadd.f32 %v906_v62, %v905_v54  ;;  %v2479_v35 = vadd.f32 %v913_v40, %v912_v30  ;;  %v2481_v55 = vadd.f32 %v920_v20, %v919_v60 }
  0xc9   : > { %v2483_v52 = vadd.f32 %v927_v22, %v926_v33  ;;  %v934_v36 = vrot.slane %v933_v25, 1  ;;  %v941_v45 = vrot.slane %v940_v41, 1  ;;  %v948_v49 = vrot.slane %v947_v43, 1 }
  0xca   : > { %v955_v50 = vrot.slane %v954_v44, 1  ;;  %v957_v46 = vsel %vm900_vm0, %v2399_v47, 0.0  ;;  %v964_v42 = vsel %vm900_vm0, %v2410_v48, 0.0  ;;  %v971_v21 = vsel %vm900_vm0, %v2412_v14, 0.0 }
  0xcb   : > { %v978_v12 = vsel %vm900_vm0, %v2414_v6, 0.0  ;;  %v2493_v7 = vadd.f32 %v934_v36, %v933_v25  ;;  %v2495_v38 = vadd.f32 %v941_v45, %v940_v41  ;;  %v2497_v39 = vadd.f32 %v948_v49, %v947_v43 }
  0xcc   : > { %v2499_v59 = vadd.f32 %v955_v50, %v954_v44  ;;  %v958_v63 = vrot.slane %v957_v46, 4  ;;  %v965_v37 = vrot.slane %v964_v42, 4  ;;  %v972_v47 = vrot.slane %v971_v21, 4 }
  0xcd   : > { %v979_v9 = vrot.slane %v978_v12, 4  ;;  %v985_v48 = vsel %vm900_vm0, %v2419_v5, 0.0  ;;  %v992_v14 = vsel %vm900_vm0, %v2421_v0, 0.0  ;;  %v999_v6 = vsel %vm900_vm0, %v2423_v3, 0.0 }
  0xce   : > { %v1006_v4 = vsel %vm900_vm0, %v2425_v53, 0.0  ;;  %v959_v58 = vadd.f32 %v958_v63, %v957_v46  ;;  %v966_v61 = vadd.f32 %v965_v37, %v964_v42  ;;  %v973_v54 = vadd.f32 %v972_v47, %v971_v21 }
  0xcf   : > { %v980_v30 = vadd.f32 %v979_v9, %v978_v12  ;;  %v986_v60 = vrot.slane %v985_v48, 4  ;;  %v993_v33 = vrot.slane %v992_v14, 4  ;;  %v1000_v23 = vrot.slane %v999_v6, 4 }
  0xd0   : > { %v1007_v29 = vrot.slane %v1006_v4, 4  ;;  %v960_v32 = vrot.slane %v959_v58, 2  ;;  %v967_v8 = vrot.slane %v966_v61, 2  ;;  %v974_v5 = vrot.slane %v973_v54, 2 }
  0xd1   : > { %v981_v62 = vrot.slane %v980_v30, 2  ;;  %v987_v40 = vadd.f32 %v986_v60, %v985_v48  ;;  %v994_v0 = vadd.f32 %v993_v33, %v992_v14  ;;  %v1001_v20 = vadd.f32 %v1000_v23, %v999_v6 }
  0xd2   : > { %v1008_v22 = vadd.f32 %v1007_v29, %v1006_v4  ;;  %v961_v3 = vadd.f32 %v960_v32, %v959_v58  ;;  %v968_v25 = vadd.f32 %v967_v8, %v966_v61  ;;  %v975_v41 = vadd.f32 %v974_v5, %v973_v54 }
  0xd3   : > { %v982_v53 = vadd.f32 %v981_v62, %v980_v30  ;;  %v988_v43 = vrot.slane %v987_v40, 2  ;;  %v995_v44 = vrot.slane %v994_v0, 2  ;;  %v1002_v36 = vrot.slane %v1001_v20, 2 }
  0xd4   : > { %v1009_v45 = vrot.slane %v1008_v22, 2  ;;  %v962_v49 = vrot.slane %v961_v3, 1  ;;  %v969_v50 = vrot.slane %v968_v25, 1  ;;  %v976_v46 = vrot.slane %v975_v41, 1 }
  0xd5   : > { %v983_v42 = vrot.slane %v982_v53, 1  ;;  %v989_v21 = vadd.f32 %v988_v43, %v987_v40  ;;  %v996_v12 = vadd.f32 %v995_v44, %v994_v0  ;;  %v1003_v63 = vadd.f32 %v1002_v36, %v1001_v20 }
  0xd6   : > { %v1010_v37 = vadd.f32 %v1009_v45, %v1008_v22  ;;  %v2509_v47 = vadd.f32 %v962_v49, %v961_v3  ;;  %v2511_v9 = vadd.f32 %v969_v50, %v968_v25  ;;  %v2513_v48 = vadd.f32 %v976_v46, %v975_v41 }
  0xd7   : > { %v2515_v14 = vadd.f32 %v983_v42, %v982_v53  ;;  %v990_v6 = vrot.slane %v989_v21, 1  ;;  %v997_v4 = vrot.slane %v996_v12, 1  ;;  %v1004_v58 = vrot.slane %v1003_v63, 1 }
  0xd8   : > { %v1011_v61 = vrot.slane %v1010_v37, 1  ;;  %v1013_v54 = vsel %vm900_vm0, %v2430_v24, 0.0  ;;  %v1020_v30 = vsel %vm900_vm0, %v2432_v51, 0.0  ;;  %v1027_v60 = vsel %vm900_vm0, %v2434_v57, 0.0 }
  0xd9   : > { %v1034_v33 = vsel %vm900_vm0, %v2436_v28, 0.0  ;;  %v2525_v23 = vadd.f32 %v990_v6, %v989_v21  ;;  %v2527_v29 = vadd.f32 %v997_v4, %v996_v12  ;;  %v2529_v32 = vadd.f32 %v1004_v58, %v1003_v63 }
  0xda   : > { %v2531_v8 = vadd.f32 %v1011_v61, %v1010_v37  ;;  %v1014_v5 = vrot.slane %v1013_v54, 4  ;;  %v1021_v62 = vrot.slane %v1020_v30, 4  ;;  %v1028_v24 = vrot.slane %v1027_v60, 4 }
  0xdb   : > { %v1035_v40 = vrot.slane %v1034_v33, 4  ;;  %v1041_v51 = vsel %vm900_vm0, %v2438_v27, 0.0  ;;  %v1048_v57 = vsel %vm900_vm0, %v2440_v17, 0.0  ;;  %v1055_v28 = vsel %vm900_vm0, %v2442_v11, 0.0 }
  0xdc   : > { %v1062_v0 = vsel %vm900_vm0, %v2444_v34, 0.0  ;;  %v1015_v20 = vadd.f32 %v1014_v5, %v1013_v54  ;;  %v1022_v22 = vadd.f32 %v1021_v62, %v1020_v30  ;;  %v1029_v3 = vadd.f32 %v1028_v24, %v1027_v60 }
  0xdd   : > { %v1036_v25 = vadd.f32 %v1035_v40, %v1034_v33  ;;  %v1042_v41 = vrot.slane %v1041_v51, 4  ;;  %v1049_v53 = vrot.slane %v1048_v57, 4  ;;  %v1056_v43 = vrot.slane %v1055_v28, 4 }
  0xde   : > { %v1063_v44 = vrot.slane %v1062_v0, 4  ;;  %v1016_v36 = vrot.slane %v1015_v20, 2  ;;  %v1023_v45 = vrot.slane %v1022_v22, 2  ;;  %v1030_v27 = vrot.slane %v1029_v3, 2 }
  0xdf   : > { %v1037_v49 = vrot.slane %v1036_v25, 2  ;;  %v1043_v50 = vadd.f32 %v1042_v41, %v1041_v51  ;;  %v1050_v17 = vadd.f32 %v1049_v53, %v1048_v57  ;;  %v1057_v46 = vadd.f32 %v1056_v43, %v1055_v28 }
  0xe0   : > { %v1064_v42 = vadd.f32 %v1063_v44, %v1062_v0  ;;  %v1017_v11 = vadd.f32 %v1016_v36, %v1015_v20  ;;  %v1024_v21 = vadd.f32 %v1023_v45, %v1022_v22  ;;  %v1031_v12 = vadd.f32 %v1030_v27, %v1029_v3 }
  0xe1   : > { %v1038_v34 = vadd.f32 %v1037_v49, %v1036_v25  ;;  %v1044_v63 = vrot.slane %v1043_v50, 2  ;;  %v1051_v37 = vrot.slane %v1050_v17, 2  ;;  %v1058_v6 = vrot.slane %v1057_v46, 2 }
  0xe2   : > { %v1065_v4 = vrot.slane %v1064_v42, 2  ;;  %v1018_v58 = vrot.slane %v1017_v11, 1  ;;  %v1025_v61 = vrot.slane %v1024_v21, 1  ;;  %v1032_v54 = vrot.slane %v1031_v12, 1 }
  0xe3   : > { %v1039_v30 = vrot.slane %v1038_v34, 1  ;;  %v1045_v60 = vadd.f32 %v1044_v63, %v1043_v50  ;;  %v1052_v33 = vadd.f32 %v1051_v37, %v1050_v17  ;;  %v1059_v5 = vadd.f32 %v1058_v6, %v1057_v46 }
  0xe4   : > { %v1066_v62 = vadd.f32 %v1065_v4, %v1064_v42  ;;  %v2541_v24 = vadd.f32 %v1018_v58, %v1017_v11  ;;  %v2543_v40 = vadd.f32 %v1025_v61, %v1024_v21  ;;  %v2545_v51 = vadd.f32 %v1032_v54, %v1031_v12 }
  0xe5   : > { %v2547_v57 = vadd.f32 %v1039_v30, %v1038_v34  ;;  %v1046_v28 = vrot.slane %v1045_v60, 1  ;;  %v1053_v0 = vrot.slane %v1052_v33, 1  ;;  %v1060_v20 = vrot.slane %v1059_v5, 1 }
  0xe6   : > { %v1067_v22 = vrot.slane %v1066_v62, 1  ;;  %v1069_v3 = vsel %vm900_vm0, %v2446_v10, 0.0  ;;  %v1076_v25 = vsel %vm900_vm0, %v2448_v15, 0.0  ;;  %v1083_v41 = vsel %vm900_vm0, %v2450_v31, 0.0 }
  0xe7   : > { %v1090_v53 = vsel %vm900_vm0, %v2452_v26, 0.0  ;;  %v2557_v43 = vadd.f32 %v1046_v28, %v1045_v60  ;;  %v2559_v44 = vadd.f32 %v1053_v0, %v1052_v33  ;;  %v2561_v36 = vadd.f32 %v1060_v20, %v1059_v5 }
  0xe8   : > { %v2563_v45 = vadd.f32 %v1067_v22, %v1066_v62  ;;  %v1070_v27 = vrot.slane %v1069_v3, 4  ;;  %v1077_v49 = vrot.slane %v1076_v25, 4  ;;  %v1084_v10 = vrot.slane %v1083_v41, 4 }
  0xe9   : > { %v1091_v50 = vrot.slane %v1090_v53, 4  ;;  %v1097_v15 = vsel %vm900_vm0, %v2454_v18, 0.0  ;;  %v1104_v31 = vsel %vm900_vm0, %v2456_v16, 0.0  ;;  %v1111_v26 = vsel %vm900_vm0, %v2458_v13, 0.0 }
  0xea   : > { %v1118_v17 = vsel %vm900_vm0, %v2460_v19, 0.0  ;;  %v1071_v46 = vadd.f32 %v1070_v27, %v1069_v3  ;;  %v1078_v42 = vadd.f32 %v1077_v49, %v1076_v25  ;;  %v1085_v11 = vadd.f32 %v1084_v10, %v1083_v41 }
  0xeb   : > { %v1092_v21 = vadd.f32 %v1091_v50, %v1090_v53  ;;  %v1098_v12 = vrot.slane %v1097_v15, 4  ;;  %v1105_v34 = vrot.slane %v1104_v31, 4  ;;  %v1112_v63 = vrot.slane %v1111_v26, 4 }
  0xec   : > { %v1119_v37 = vrot.slane %v1118_v17, 4  ;;  %v1072_v6 = vrot.slane %v1071_v46, 2  ;;  %v1079_v4 = vrot.slane %v1078_v42, 2  ;;  %v1086_v18 = vrot.slane %v1085_v11, 2 }
  0xed   : > { %v1093_v58 = vrot.slane %v1092_v21, 2  ;;  %v1099_v61 = vadd.f32 %v1098_v12, %v1097_v15  ;;  %v1106_v16 = vadd.f32 %v1105_v34, %v1104_v31  ;;  %v1113_v54 = vadd.f32 %v1112_v63, %v1111_v26  ;;  %v2720_v12 = vld [vmem:[#allocation9_spill] sm:$0xff]  ;;  %v2721_v63 = vld [vmem:[#allocation10_spill] sm:$0xff] }
  0xee   : > { %v1120_v30 = vadd.f32 %v1119_v37, %v1118_v17  ;;  %v1073_v13 = vadd.f32 %v1072_v6, %v1071_v46  ;;  %v1080_v60 = vadd.f32 %v1079_v4, %v1078_v42  ;;  %v1087_v33 = vadd.f32 %v1086_v18, %v1085_v11 }
  0xef   : > { %v1094_v19 = vadd.f32 %v1093_v58, %v1092_v21  ;;  %v1100_v5 = vrot.slane %v1099_v61, 2  ;;  %v1107_v62 = vrot.slane %v1106_v16, 2  ;;  %v1114_v28 = vrot.slane %v1113_v54, 2 }
  0xf0   : > { %v1121_v0 = vrot.slane %v1120_v30, 2  ;;  %v1074_v20 = vrot.slane %v1073_v13, 1  ;;  %v1081_v22 = vrot.slane %v1080_v60, 1  ;;  %v1088_v3 = vrot.slane %v1087_v33, 1 }
  0xf1   : > { %v1095_v25 = vrot.slane %v1094_v19, 1  ;;  %v1101_v41 = vadd.f32 %v1100_v5, %v1099_v61  ;;  %v1108_v53 = vadd.f32 %v1107_v62, %v1106_v16  ;;  %v1115_v27 = vadd.f32 %v1114_v28, %v1113_v54  ;;  %v2722_v61 = vld [vmem:[#allocation11_spill] sm:$0xff]  ;;  %v2723_v54 = vld [vmem:[#allocation12_spill] sm:$0xff]  ;;  %v2729_v5 = vld [vmem:[#allocation18_spill] sm:$0xff] }
  0xf2   : > { %v1122_v49 = vadd.f32 %v1121_v0, %v1120_v30  ;;  %v1075_v10 = vadd.f32 %v1074_v20, %v1073_v13  ;;  %v1082_v50 = vadd.f32 %v1081_v22, %v1080_v60  ;;  %v1089_v15 = vadd.f32 %v1088_v3, %v1087_v33  ;;  %v2728_v33 = vld [vmem:[#allocation17_spill] sm:$0xff]  ;;  %v2730_v62 = vld [vmem:[#allocation19_spill] sm:$0xff]  ;;  %v2731_v28 = vld [vmem:[#allocation20_spill] sm:$0xff] }
  0xf3   : > { %v1096_v31 = vadd.f32 %v1095_v25, %v1094_v19  ;;  %v1102_v26 = vrot.slane %v1101_v41, 1  ;;  %v1109_v17 = vrot.slane %v1108_v53, 1  ;;  %v1116_v46 = vrot.slane %v1115_v27, 1  ;;  %v2732_v0 = vld [vmem:[#allocation21_spill] sm:$0xff]  ;;  %v2733_v20 = vld [vmem:[#allocation22_spill] sm:$0xff]  ;;  %v2734_v22 = vld [vmem:[#allocation23_spill] sm:$0xff] }
  0xf4   : > { %v1123_v42 = vrot.slane %v1122_v49, 1  ;;  %v1125_v11 = vadd.f32 %v2477_v1, %v2214_v56  ;;  %v1126_v21 = vadd.f32 %v2479_v35, %v2219_v2  ;;  %v1127_v34 = vadd.f32 %v2481_v55, %v2720_v12  ;;  %v2724_v56 = vld [vmem:[#allocation13_spill] sm:$0xff]  ;;  %v2725_v2 = vld [vmem:[#allocation14_spill] sm:$0xff]  ;;  %v2726_v55 = vld [vmem:[#allocation15_spill] sm:$0xff] }
  0xf5   : > { %v1128_v37 = vadd.f32 %v2483_v52, %v2721_v63  ;;  %v1103_v6 = vadd.f32 %v1102_v26, %v1101_v41  ;;  %v1110_v4 = vadd.f32 %v1109_v17, %v1108_v53  ;;  %v1117_v18 = vadd.f32 %v1116_v46, %v1115_v27  ;;  %v2727_v52 = vld [vmem:[#allocation16_spill] sm:$0xff]  ;;  %v2736_v25 = vld [vmem:[#allocation25_spill] sm:$0xff]  ;;  %v2737_v41 = vld [vmem:[#allocation26_spill] sm:$0xff] }
  0xf6   : > { %v1124_v58 = vadd.f32 %v1123_v42, %v1122_v49  ;;  %v1129_v16 = vadd.f32 %v2493_v7, %v2722_v61  ;;  %v1130_v30 = vadd.f32 %v2495_v38, %v2723_v54  ;;  %v1131_v1 = vadd.f32 %v2497_v39, %v2724_v56  ;;  %v2735_v3 = vld [vmem:[#allocation24_spill] sm:$0xff]  ;;  %v2738_v53 = vld [vmem:[#allocation27_spill] sm:$0xff]  ;;  %v2740_v49 = vld [vmem:[#allocation29_spill] sm:$0xff] }
  0xf7   : > { %v1132_v35 = vadd.f32 %v2499_v59, %v2725_v2  ;;  %v1133_v13 = vadd.f32 %v2509_v47, %v2726_v55  ;;  %v1134_v60 = vadd.f32 %v2511_v9, %v2727_v52  ;;  %v1135_v19 = vadd.f32 %v2513_v48, %v2728_v33  ;;  %v2739_v27 = vld [vmem:[#allocation28_spill] sm:$0xff]  ;;  %v2741_v26 = vld [vmem:[#allocation30_spill] sm:$0xff]  ;;  %v2742_v17 = vld [vmem:[#allocation31_spill] sm:$0xff] }
  0xf8   : > { %v1136_v7 = vadd.f32 %v2515_v14, %v2729_v5  ;;  %v1137_v38 = vadd.f32 %v2525_v23, %v2730_v62  ;;  %v1138_v39 = vadd.f32 %v2527_v29, %v2731_v28  ;;  %v1139_v59 = vadd.f32 %v2529_v32, %v2732_v0  ;;  %v2743_v46 = vld [vmem:[#allocation32_spill] sm:$0xff]  ;;  %v2745_v63 = vld [vmem:[#allocation34_spill] sm:$0xff]  ;;  %v2746_v61 = vld [vmem:[#allocation35_spill] sm:$0xff] }
  0xf9   : > { %v1140_v47 = vadd.f32 %v2531_v8, %v2733_v20  ;;  %v1141_v9 = vadd.f32 %v2541_v24, %v2734_v22  ;;  %v1142_v48 = vadd.f32 %v2543_v40, %v2735_v3  ;;  %v1143_v14 = vadd.f32 %v2545_v51, %v2736_v25  ;;  %v2744_v51 = vld [vmem:[#allocation33_spill] sm:$0xff]  ;;  %v2749_v55 = vld [vmem:[#allocation38_spill] sm:$0xff]  ;;  %v2751_v62 = vld [vmem:[#allocation7_spill] sm:$0xff] }
  0xfa   : > { %v1144_v23 = vadd.f32 %v2547_v57, %v2737_v41  ;;  %v1145_v29 = vadd.f32 %v2557_v43, %v2738_v53  ;;  %v1146_v32 = vadd.f32 %v2559_v44, %v2739_v27  ;;  %v1147_v8 = vadd.f32 %v2561_v36, %v2740_v49  ;;  %v2747_v43 = vld [vmem:[#allocation36_spill] sm:$0xff]  ;;  %v2748_v2 = vld [vmem:[#allocation37_spill] sm:$0xff] }
  0xfb   : > { %v1148_v24 = vadd.f32 %v2563_v45, %v2741_v26  ;;  %v1149_v40 = vadd.f32 %v1075_v10, %v2742_v17  ;;  %v1150_v42 = vadd.f32 %v1082_v50, %v2743_v46  ;;  %v1151_v12 = vadd.f32 %v1089_v15, %v2744_v51  ;;  %v2750_v10 = vld [vmem:[#allocation8_spill] sm:$0xff] }
  0xfc   : > { %v1152_v57 = vadd.f32 %v1096_v31, %v2745_v63  ;;  %v1153_v54 = vadd.f32 %v1103_v6, %v2746_v61  ;;  %v1154_v56 = vadd.f32 %v1110_v4, %v2747_v43  ;;  %v1155_v44 = vadd.f32 %v1117_v18, %v2748_v2 }
  0xfd   : > { %v1156_v52 = vadd.f32 %v1124_v58, %v2749_v55  ;;  %v1189_v36 = vcombine.low %v1125_v11, %v1126_v21  ;;  %v1190_v33 = vcombine.low %v1127_v34, %v1128_v37  ;;  %v1191_v45 = vcombine.low %v1129_v16, %v1130_v30 }
  0xfe   : > { %v1192_v5 = vcombine.low %v1131_v1, %v1132_v35  ;;  %v2752_v50 = vunpack.c.0.s8 %v2751_v62  ;;  %v1238_v15 = vcombine.low %v1133_v13, %v1134_v60  ;;  %v1239_v0 = vcombine.low %v1135_v19, %v1136_v7 }
  0xff   : > { %v1240_v31 = vcombine.low %v1137_v38, %v1138_v39  ;;  %v1241_v20 = vcombine.low %v1139_v59, %v1140_v47  ;;  %v1287_v6 = vcombine.low %v1141_v9, %v1142_v48  ;;  %v1288_v22 = vcombine.low %v1143_v14, %v1144_v23 }
 0x100   : > { %v1198_v28 = vsub.s32 %v2752_v50, %v2750_v10  ;;  %v1289_v4 = vcombine.low %v1145_v29, %v1146_v32  ;;  %v1290_v1 = vcombine.low %v1147_v8, %v1148_v24  ;;  %v1336_v47 = vcombine.low %v1149_v40, %v1150_v42 }
 0x101   : > { %v1337_v41 = vcombine.low %v1151_v12, %v1152_v57  ;;  %v1338_v29 = vcombine.low %v1153_v54, %v1154_v56  ;;  %v1339_v27 = vcombine.low %v1155_v44, %v1156_v52 }
 0x102   : > { %v1199_v3 = vrot.slane %v1189_v36, %v1198_v28  ;;  %v1206_v18 = vrot.slane %v1190_v33, %v1198_v28  ;;  %v1213_v25 = vrot.slane %v1191_v45, %v1198_v28  ;;  %v1220_v58 = vrot.slane %v1192_v5, %v1198_v28 }
 0x103   : > { %v1248_v11 = vrot.slane %v1238_v15, %v1198_v28  ;;  %v1255_v21 = vrot.slane %v1239_v0, %v1198_v28  ;;  %v1262_v34 = vrot.slane %v1240_v31, %v1198_v28  ;;  %v1269_v37 = vrot.slane %v1241_v20, %v1198_v28 }
 0x104   : > { %v1221_v16 = vcombine.low %v1199_v3, %v1206_v18  ;;  %v1222_v30 = vcombine.low %v1213_v25, %v1220_v58  ;;  %v1297_v35 = vrot.slane %v1287_v6, %v1198_v28  ;;  %v1304_v19 = vrot.slane %v1288_v22, %v1198_v28 }
 0x105   : > { %v1270_v13 = vcombine.low %v1248_v11, %v1255_v21  ;;  %v1271_v60 = vcombine.low %v1262_v34, %v1269_v37  ;;  %v1311_v7 = vrot.slane %v1289_v4, %v1198_v28  ;;  %v1318_v59 = vrot.slane %v1290_v1, %v1198_v28 }
 0x106   : > { %v1229_v38 = vrot.slane %v1221_v16, %v1198_v28  ;;  %v1236_v39 = vrot.slane %v1222_v30, %v1198_v28  ;;  %v1319_v14 = vcombine.low %v1297_v35, %v1304_v19  ;;  %v1346_v8 = vrot.slane %v1336_v47, %v1198_v28 }
 0x107   : > { %v1278_v9 = vrot.slane %v1270_v13, %v1198_v28  ;;  %v1285_v48 = vrot.slane %v1271_v60, %v1198_v28  ;;  %v1320_v53 = vcombine.low %v1311_v7, %v1318_v59  ;;  %v1353_v26 = vrot.slane %v1337_v41, %v1198_v28 }
 0x108   : > { %v1237_v23 = vcombine.low %v1229_v38, %v1236_v39  ;;  %v1327_v49 = vrot.slane %v1319_v14, %v1198_v28  ;;  %v1360_v17 = vrot.slane %v1338_v29, %v1198_v28  ;;  %v1367_v46 = vrot.slane %v1339_v27, %v1198_v28 }
 0x109   : > { %v1286_v32 = vcombine.low %v1278_v9, %v1285_v48  ;;  %v1334_v24 = vrot.slane %v1320_v53, %v1198_v28  ;;  %v1368_v40 = vcombine.low %v1346_v8, %v1353_v26 }
 0x10a   : > { %1389 = vst [vmem:[%s475_s26] sm:$0xff] %v1237_v23  ;;  %v1369_v51 = vcombine.low %v1360_v17, %v1367_v46 }
 0x10b   : > { %1390 = vst [vmem:[%s475_s26 + $0x8] sm:$0xff] %v1286_v32  ;;  %v1335_v42 = vcombine.low %v1327_v49, %v1334_v24  ;;  %v1376_v12 = vrot.slane %v1368_v40, %v1198_v28 }
 0x10c   : > { %v1383_v63 = vrot.slane %v1369_v51, %v1198_v28 }
 0x10d   : > { %1391 = vst [vmem:[%s475_s26 + $0x10] sm:$0xff] %v1335_v42 }
 0x10e   : > { %v1384_v57 = vcombine.low %v1376_v12, %v1383_v63 }
 0x110   : > { %1392 = vst [vmem:[%s475_s26 + $0x18] sm:$0xff] %v1384_v57 }
 0x111   : > { %1620 = shalt.err (!%p1617_p7)
}
 0x112   : > { %s1621_s17 = scalar_lea.hbm %s1408_s3, 512  ;;  %s1625_s21 = scalar_lea.hbm %s2683_s2, 2048 }
 0x113   : > { %p1622_p10 = scmp.ne.s32.totalorder %s1408_s3, %s1621_s17  ;;  %p1626_p13 = scmp.lt.s32.totalorder %s1408_s3, %s2683_s2 }
 0x114   : > { %p1627_p0 = scmp.lt.s32.totalorder %s1625_s21, %s1621_s17 }
 0x115   : > { %p1623_p11 = pnand %p1622_p10, %p1778_p8 }
 0x116   : > { %p1628_p1 = por %p1627_p0, %p1626_p13 }
 0x117   : > { %p1624_p12 = pneg %p1623_p11 }
 0x119   : > { %p1629_p2 = pnand %p1628_p1, %p1624_p12 }
 0x11b   : > { %1632 = shalt.err (!%p1629_p2)
}
 0x11c   : > { %1535 = dma.vmem_to_hbm [thread:$0]  (%p1778_p8), %s1411_s13, 512, %s1408_s3, %s1394_s4  }
 0x11d PF: > { %p1541_p3 = scmp.ge.s32.totalorder %s1699_s16, 2  ;;  %s1422_s27 = sand.u32 1, %s1671_s9  }
 0x11e   : > { %s1423_s12 = scalar_lea.sflag [#allocation5], %s1422_s27 }
 0x11f   : > { %p1538_p4 = pnand %p1541_p3, %p1782_p9 }
 0x121   : > { %p1539_p5 = pneg %p1538_p4 }
 0x123   : > { %1666 = dma.done.wait (%p1539_p5), %s1423_s12, 512  }
 0x124   : > { %1668 = vsyncadd (%p1539_p5), %s1423_s12, 4294966784  ;;  %s15_s16 = sadd.s32 1, %s1699_s16   ;;  %s2753_s9 = smov %s1675_s10 }
 0x125   : > { %p12_p6 = scmp.ge.s32.totalorder %s15_s16, 6   ;;  %s2754_s10 = smov %s1679_s11 }
 0x126   : > { %s2755_s11 = smov %s1790_s28  ;;  %s2756_s12 = smov %s1691_s14 }
 0x127   : > { %s2757_s13 = smov %s1695_s15  ;;  %s2758_s14 = smov %s2761_s19 }
 0x128   : > { %s2759_s15 = smov %s2765_s20  ;;  %14 = sbr.rel (!%p12_p6) target bundleno = 5 (0x5), region = 124 }
 0x12d   :  { %1428 = vsyncpa [#allocation5], 1 }
 0x12e   :  { %1430 = vsyncpa [#allocation5 + $0x1], 1 }

</bundles_post_ra>
